<compile_context>
chip_gen: v6e
topology: v6e:2x2x1
jax: 0.10.0
libtpu: 0.0.40
codegen_flags: <defaults>
</compile_context>

<pallas_src>
import jax
import jax.numpy as jnp
from jax import lax
from jax.experimental import pallas as pl
from jax.experimental.pallas import tpu as pltpu

NEG_SLOPE = 0.01
OUT_CH = 64


def _leaky(x):
    return jnp.where(x > 0, x, NEG_SLOPE * x)


def inception_kernel(x_ref, w12_ref, b12_ref, w3_ref, b3_ref,
                     wtap_ref, btap_ref, out_ref):
    """One batch tile per grid step.

    x_ref:    (B, H, C)      input tile, channels-last
    w12_ref:  (C, 128)       [branch1_1x1 || branch2_1x1] weights (in x out)
    b12_ref:  (1, 128)       [b1a || b2a]
    w3_ref:   (C, 128)       [branch3_1x1 || zeros]
    b3_ref:   (1, 128)       [b3 || zeros]
    wtap_ref: (5, 128, 128)  per-H-shift block-diagonal weights of the fused
                             (3,1)/(5,1) convs (shift s = tap_index - 2)
    btap_ref: (1, 128)       [b1b || b2b]
    out_ref:  (B, H, 256)    [branch1 | branch2 | branch3 | zeros]
    """
    f32 = jnp.float32
    B, H, C = x_ref.shape
    M = B * H
    xf = x_ref[...].reshape(M, C)                       # (B*H, C)

    # Row index within each image, for boundary masking of H-shifts across the
    # flattened (B*H) row axis.
    r = lax.broadcasted_iota(jnp.int32, (M, 1), 0) % H

    def shift_rows(a, s, fill):
        # result[m, :] = a[m + s, :] if row m+s is inside the same image, else `fill`.
        if s == 0:
            return a
        rolled = pltpu.roll(a, shift=(-s) % M, axis=0)  # rolled[m] = a[(m + s) % M]
        valid = jnp.logical_and(r + s >= 0, r + s < H)
        return jnp.where(valid, rolled, fill)

    # ---- branch 3: MaxPool2d((3,1), stride 1, pad (1,0)) -> fused 1x1 conv ----
    pooled = jnp.maximum(xf,
                         jnp.maximum(shift_rows(xf, -1, -jnp.inf),
                                     shift_rows(xf, 1, -jnp.inf)))
    right = _leaky(jnp.dot(pooled, w3_ref[...], preferred_element_type=f32)
                   + b3_ref[...])                       # (M, 128): [br3 | 0]
    out_ref[:, :, 128:256] = right.reshape(B, H, 128)

    # ---- branches 1 & 2: fused 1x1 convs -> leaky ----
    h12 = _leaky(jnp.dot(xf, w12_ref[...], preferred_element_type=f32)
                 + b12_ref[...])                        # (M, 128): [h1 | h2]

    # ---- fused (3,1)/(5,1) "same" convs over h12: one matmul per H-shift ----
    acc = jnp.broadcast_to(btap_ref[...], (M, 2 * OUT_CH))
    for j in range(5):                                  # static unroll over shifts
        s = j - 2
        acc = acc + jnp.dot(shift_rows(h12, s, 0.0), wtap_ref[j],
                            preferred_element_type=f32)
    out_ref[:, :, 0:128] = _leaky(acc).reshape(B, H, 128)


def init_params(key, input_channels):
    """Deterministic synthetic parameters (same shapes as the torch module)."""
    ks = jax.random.split(key, 10)
    s = 0.1
    return dict(
        w1a=jax.random.normal(ks[0], (input_channels, OUT_CH), jnp.float32) * s,
        b1a=jax.random.normal(ks[1], (1, OUT_CH), jnp.float32) * s,
        w1b=jax.random.normal(ks[2], (3, OUT_CH, OUT_CH), jnp.float32) * s,
        b1b=jax.random.normal(ks[3], (1, OUT_CH), jnp.float32) * s,
        w2a=jax.random.normal(ks[4], (input_channels, OUT_CH), jnp.float32) * s,
        b2a=jax.random.normal(ks[5], (1, OUT_CH), jnp.float32) * s,
        w2b=jax.random.normal(ks[6], (5, OUT_CH, OUT_CH), jnp.float32) * s,
        b2b=jax.random.normal(ks[7], (1, OUT_CH), jnp.float32) * s,
        w3=jax.random.normal(ks[8], (input_channels, OUT_CH), jnp.float32) * s,
        b3=jax.random.normal(ks[9], (1, OUT_CH), jnp.float32) * s,
    )


def _pack_params(p):
    """Fuse per-branch torch-layout weights into the kernel's packed layout."""
    f32 = jnp.float32
    C = p["w1a"].shape[0]
    w12 = jnp.concatenate([p["w1a"], p["w2a"]], axis=1)                   # (C, 128)
    b12 = jnp.concatenate([p["b1a"], p["b2a"]], axis=1)                   # (1, 128)
    w3 = jnp.concatenate([p["w3"], jnp.zeros((C, OUT_CH), f32)], axis=1)  # (C, 128)
    b3 = jnp.concatenate([p["b3"], jnp.zeros((1, OUT_CH), f32)], axis=1)  # (1, 128)
    wtap = jnp.zeros((5, 2 * OUT_CH, 2 * OUT_CH), f32)
    for j in range(5):
        s = j - 2
        wtap = wtap.at[j, OUT_CH:, OUT_CH:].set(p["w2b"][s + 2])          # branch2 tap
        if 0 <= s + 1 < 3:
            wtap = wtap.at[j, :OUT_CH, :OUT_CH].set(p["w1b"][s + 1])      # branch1 tap
    btap = jnp.concatenate([p["b1b"], p["b2b"]], axis=1)                  # (1, 128)
    return w12, b12, w3, b3, wtap, btap


def _pick_batch_tile(n, h):
    """Largest divisor of n giving ~<=256 rows per tile, keeping grid >= 2 if possible."""
    max_b = max(1, 256 // max(h, 1))
    divs = [b for b in range(1, n + 1) if n % b == 0 and b <= max_b]
    multi = [b for b in divs if n // b >= 2]
    return max(multi) if multi else max(divs)


@jax.jit
def inception_forward(x_nchw, params):
    """x_nchw: (N, C, H, 1) -> (N, 192, H)  (matches torch cat + squeeze(3), eval mode)."""
    N, C, H, W = x_nchw.shape
    assert W == 1, "InceptionModule expects width-1 inputs (it squeezes dim 3)"
    x = jnp.transpose(x_nchw[..., 0], (0, 2, 1)).astype(jnp.float32)  # (N, H, C)

    w12, b12, w3, b3, wtap, btap = _pack_params(params)
    B = _pick_batch_tile(N, H)

    full = lambda shape: pl.BlockSpec(shape, lambda n: (0,) * len(shape))

    out = pl.pallas_call(
        inception_kernel,
        out_shape=jax.ShapeDtypeStruct((N, H, 4 * OUT_CH), jnp.float32),
        grid_spec=pltpu.PrefetchScalarGridSpec(
            num_scalar_prefetch=0,
            grid=(N // B,),
            in_specs=[
                pl.BlockSpec((B, H, C), lambda n: (n, 0, 0)),
                full((C, 2 * OUT_CH)), full((1, 2 * OUT_CH)),
                full((C, 2 * OUT_CH)), full((1, 2 * OUT_CH)),
                full((5, 2 * OUT_CH, 2 * OUT_CH)), full((1, 2 * OUT_CH)),
            ],
            out_specs=pl.BlockSpec((B, H, 4 * OUT_CH), lambda n: (n, 0, 0)),
        ),
        compiler_params=pltpu.CompilerParams(
            dimension_semantics=("parallel",)),
    )(x, w12, b12, w3, b3, wtap, btap)

    # Drop the lane-padding channels and match torch layout (N, 192, H).
    return jnp.transpose(out[..., :3 * OUT_CH], (0, 2, 1))


def _reference_forward(x_nchw, p):
    """Pure-jnp reference of the same math (eval mode), for a sanity check."""
    x = jnp.transpose(x_nchw[..., 0], (0, 2, 1)).astype(jnp.float32)  # (N, H, C)
    N, H, C = x.shape
    leaky = lambda v: jnp.where(v > 0, v, NEG_SLOPE * v)

    def conv_h(h, w, b, k):
        pad = k // 2
        hp = jnp.pad(h, ((0, 0), (pad, pad), (0, 0)))
        acc = jnp.broadcast_to(b, (N, H, OUT_CH))
        for t in range(k):
            acc = acc + jnp.einsum("nhc,co->nho", hp[:, t:t + H], w[t])
        return acc

    b1 = leaky(jnp.einsum("nhc,co->nho", x, p["w1a"]) + p["b1a"])
    b1 = leaky(conv_h(b1, p["w1b"], p["b1b"], 3))
    b2 = leaky(jnp.einsum("nhc,co->nho", x, p["w2a"]) + p["b2a"])
    b2 = leaky(conv_h(b2, p["w2b"], p["b2b"], 5))
    xp = jnp.pad(x, ((0, 0), (1, 1), (0, 0)), constant_values=-jnp.inf)
    pooled = jnp.maximum(jnp.maximum(xp[:, 0:H], xp[:, 1:H + 1]), xp[:, 2:H + 2])
    b3 = leaky(jnp.einsum("nhc,co->nho", pooled, p["w3"]) + p["b3"])
    return jnp.transpose(jnp.concatenate([b1, b2, b3], axis=-1), (0, 2, 1))


if __name__ == "__main__":
    key = jax.random.PRNGKey(0)
    k_x, k_p = jax.random.split(key)

    N, C, H, W = 8, 4, 16, 1          # small shapes; batch tile B=4 -> grid of 2
    x = jax.random.normal(k_x, (N, C, H, W), jnp.float32)
    params = init_params(k_p, C)

    out = jax.block_until_ready(inception_forward(x, params))
    ref = _reference_forward(x, params)

    assert out.shape == (N, 3 * OUT_CH, H), out.shape
    assert jnp.allclose(out, ref, atol=1e-3, rtol=1e-3), (
        "mismatch vs reference, max abs err = %e"
        % float(jnp.max(jnp.abs(out - ref))))

    print("KERNEL_OK")
</pallas_src>

<mosaic_0001>
module attributes {stable_mosaic.version = 11 : i64} {
  func.func @inception_kernel(%arg0: i32, %arg1: memref<4x16x4xf32, #tpu.memory_space<vmem>>, %arg2: memref<4x128xf32, #tpu.memory_space<vmem>>, %arg3: memref<1x128xf32, #tpu.memory_space<vmem>>, %arg4: memref<4x128xf32, #tpu.memory_space<vmem>>, %arg5: memref<1x128xf32, #tpu.memory_space<vmem>>, %arg6: memref<5x128x128xf32, #tpu.memory_space<vmem>>, %arg7: memref<1x128xf32, #tpu.memory_space<vmem>>, %arg8: memref<4x16x256xf32, #tpu.memory_space<vmem>>) attributes {dimension_semantics = [#tpu.dimension_semantics<parallel>], iteration_bounds = array<i64: 2>, scalar_prefetch = 0 : i64, scratch_operands = 0 : i64, tpu.core_type = #tpu.core_type<tc>, window_params = [{transform_indices = @transform_0, window_bounds = array<i64: 4, 16, 4>}, {pipeline_mode = #tpu.pipeline_mode<synchronous>, transform_indices = @transform_1, window_bounds = array<i64: 4, 128>}, {pipeline_mode = #tpu.pipeline_mode<synchronous>, transform_indices = @transform_2, window_bounds = array<i64: 1, 128>}, {pipeline_mode = #tpu.pipeline_mode<synchronous>, transform_indices = @transform_3, window_bounds = array<i64: 4, 128>}, {pipeline_mode = #tpu.pipeline_mode<synchronous>, transform_indices = @transform_4, window_bounds = array<i64: 1, 128>}, {pipeline_mode = #tpu.pipeline_mode<synchronous>, transform_indices = @transform_5, window_bounds = array<i64: 5, 128, 128>}, {pipeline_mode = #tpu.pipeline_mode<synchronous>, transform_indices = @transform_6, window_bounds = array<i64: 1, 128>}, {transform_indices = @transform_7, window_bounds = array<i64: 4, 16, 256>}]} {
    %c0 = arith.constant 0 : index
    %c0_0 = arith.constant 0 : index
    %c0_1 = arith.constant 0 : index
    %0 = vector.load %arg1[%c0, %c0_0, %c0_1] : memref<4x16x4xf32, #tpu.memory_space<vmem>>, vector<4x16x4xf32>
    %1 = vector.shape_cast %0 : vector<4x16x4xf32> to vector<64x4xf32>
    %2 = tpu.iota {dimensions = array<i32: 0>} : vector<64x1xi32>
    %c16_i32 = arith.constant 16 : i32
    %c0_i32 = arith.constant 0 : i32
    %3 = arith.cmpi eq, %c16_i32, %c0_i32 : i32
    %c1_i32 = arith.constant 1 : i32
    %4 = arith.select %3, %c1_i32, %c16_i32 : i32
    %5 = vector.broadcast %4 : i32 to vector<64x1xi32>
    %6 = arith.remsi %2, %5 : vector<64x1xi32>
    %c0_i32_2 = arith.constant 0 : i32
    %7 = vector.broadcast %c0_i32_2 : i32 to vector<64x1xi32>
    %8 = arith.cmpi ne, %6, %7 : vector<64x1xi32>
    %c0_i32_3 = arith.constant 0 : i32
    %9 = vector.broadcast %c0_i32_3 : i32 to vector<64x1xi32>
    %10 = arith.cmpi slt, %6, %9 : vector<64x1xi32>
    %c0_i32_4 = arith.constant 0 : i32
    %11 = arith.cmpi slt, %4, %c0_i32_4 : i32
    %12 = vector.broadcast %11 : i1 to vector<64x1xi1>
    %13 = vector.broadcast %12 : vector<64x1xi1> to vector<64x1xi1>
    %14 = arith.xori %10, %13 : vector<64x1xi1>
    %15 = arith.andi %14, %8 : vector<64x1xi1>
    %16 = vector.broadcast %4 : i32 to vector<64x1xi32>
    %17 = arith.addi %6, %16 : vector<64x1xi32>
    %18 = arith.select %15, %17, %6 : vector<64x1xi1>, vector<64x1xi32>
    %c1_i32_5 = arith.constant 1 : i32
    %19 = tpu.dynamic_rotate %1 by %c1_i32_5 dim 0 : vector<64x4xf32>, i32 -> vector<64x4xf32>
    %c-1_i32 = arith.constant -1 : i32
    %20 = vector.broadcast %c-1_i32 : i32 to vector<64x1xi32>
    %21 = arith.addi %18, %20 : vector<64x1xi32>
    %c0_i32_6 = arith.constant 0 : i32
    %22 = vector.broadcast %c0_i32_6 : i32 to vector<64x1xi32>
    %23 = arith.cmpi sge, %21, %22 : vector<64x1xi32>
    %c-1_i32_7 = arith.constant -1 : i32
    %24 = vector.broadcast %c-1_i32_7 : i32 to vector<64x1xi32>
    %25 = arith.addi %18, %24 : vector<64x1xi32>
    %c16_i32_8 = arith.constant 16 : i32
    %26 = vector.broadcast %c16_i32_8 : i32 to vector<64x1xi32>
    %27 = arith.cmpi slt, %25, %26 : vector<64x1xi32>
    %28 = arith.andi %23, %27 : vector<64x1xi1>
    %cst = arith.constant 0xFF800000 : f32
    %29 = vector.shape_cast %28 : vector<64x1xi1> to vector<64x1xi1>
    %30 = vector.broadcast %29 : vector<64x1xi1> to vector<64x4xi1>
    %31 = vector.broadcast %cst : f32 to vector<64x4xf32>
    %32 = arith.select %30, %19, %31 : vector<64x4xi1>, vector<64x4xf32>
    %c63_i32 = arith.constant 63 : i32
    %33 = tpu.dynamic_rotate %1 by %c63_i32 dim 0 : vector<64x4xf32>, i32 -> vector<64x4xf32>
    %c1_i32_9 = arith.constant 1 : i32
    %34 = vector.broadcast %c1_i32_9 : i32 to vector<64x1xi32>
    %35 = arith.addi %18, %34 : vector<64x1xi32>
    %c0_i32_10 = arith.constant 0 : i32
    %36 = vector.broadcast %c0_i32_10 : i32 to vector<64x1xi32>
    %37 = arith.cmpi sge, %35, %36 : vector<64x1xi32>
    %c1_i32_11 = arith.constant 1 : i32
    %38 = vector.broadcast %c1_i32_11 : i32 to vector<64x1xi32>
    %39 = arith.addi %18, %38 : vector<64x1xi32>
    %c16_i32_12 = arith.constant 16 : i32
    %40 = vector.broadcast %c16_i32_12 : i32 to vector<64x1xi32>
    %41 = arith.cmpi slt, %39, %40 : vector<64x1xi32>
    %42 = arith.andi %37, %41 : vector<64x1xi1>
    %cst_13 = arith.constant 0xFF800000 : f32
    %43 = vector.shape_cast %42 : vector<64x1xi1> to vector<64x1xi1>
    %44 = vector.broadcast %43 : vector<64x1xi1> to vector<64x4xi1>
    %45 = vector.broadcast %cst_13 : f32 to vector<64x4xf32>
    %46 = arith.select %44, %33, %45 : vector<64x4xi1>, vector<64x4xf32>
    %47 = arith.maximumf %32, %46 : vector<64x4xf32>
    %48 = arith.maximumf %1, %47 : vector<64x4xf32>
    %c0_14 = arith.constant 0 : index
    %c0_15 = arith.constant 0 : index
    %49 = vector.load %arg4[%c0_14, %c0_15] : memref<4x128xf32, #tpu.memory_space<vmem>>, vector<4x128xf32>
    %cst_16 = arith.constant dense<0.000000e+00> : vector<64x128xf32>
    %50 = tpu.matmul %48, %49, %cst_16 {dimension_numbers = #tpu.dot_dimension_numbers<[1], [0], [0], [1], [0, 0, 1, 1], [], []>} : vector<64x4xf32>, vector<4x128xf32>, vector<64x128xf32> -> vector<64x128xf32>
    %c0_17 = arith.constant 0 : index
    %c0_18 = arith.constant 0 : index
    %51 = vector.load %arg5[%c0_17, %c0_18] : memref<1x128xf32, #tpu.memory_space<vmem>>, vector<1x128xf32>
    %52 = vector.broadcast %51 : vector<1x128xf32> to vector<64x128xf32>
    %53 = arith.addf %50, %52 : vector<64x128xf32>
    %cst_19 = arith.constant 0.000000e+00 : f32
    %54 = vector.broadcast %cst_19 : f32 to vector<64x128xf32>
    %55 = arith.cmpf ogt, %53, %54 : vector<64x128xf32>
    %cst_20 = arith.constant 0.00999999977 : f32
    %56 = vector.broadcast %cst_20 : f32 to vector<64x128xf32>
    %57 = arith.mulf %56, %53 : vector<64x128xf32>
    %58 = arith.select %55, %53, %57 : vector<64x128xi1>, vector<64x128xf32>
    %59 = vector.shape_cast %58 : vector<64x128xf32> to vector<4x16x128xf32>
    %c0_21 = arith.constant 0 : index
    %c0_22 = arith.constant 0 : index
    %c128 = arith.constant 128 : index
    %60 = vector.load %arg8[%c0_21, %c0_22, %c128] : memref<4x16x256xf32, #tpu.memory_space<vmem>>, vector<4x16x128xf32>
    tpu.vector_store %arg8[%c0_21, %c0_22, %c128], %59 {strides = array<i32>} : memref<4x16x256xf32, #tpu.memory_space<vmem>>, vector<4x16x128xf32>,
    %c0_23 = arith.constant 0 : index
    %c0_24 = arith.constant 0 : index
    %61 = vector.load %arg2[%c0_23, %c0_24] : memref<4x128xf32, #tpu.memory_space<vmem>>, vector<4x128xf32>
    %cst_25 = arith.constant dense<0.000000e+00> : vector<64x128xf32>
    %62 = tpu.matmul %1, %61, %cst_25 {dimension_numbers = #tpu.dot_dimension_numbers<[1], [0], [0], [1], [0, 0, 1, 1], [], []>} : vector<64x4xf32>, vector<4x128xf32>, vector<64x128xf32> -> vector<64x128xf32>
    %c0_26 = arith.constant 0 : index
    %c0_27 = arith.constant 0 : index
    %63 = vector.load %arg3[%c0_26, %c0_27] : memref<1x128xf32, #tpu.memory_space<vmem>>, vector<1x128xf32>
    %64 = vector.broadcast %63 : vector<1x128xf32> to vector<64x128xf32>
    %65 = arith.addf %62, %64 : vector<64x128xf32>
    %cst_28 = arith.constant 0.000000e+00 : f32
    %66 = vector.broadcast %cst_28 : f32 to vector<64x128xf32>
    %67 = arith.cmpf ogt, %65, %66 : vector<64x128xf32>
    %cst_29 = arith.constant 0.00999999977 : f32
    %68 = vector.broadcast %cst_29 : f32 to vector<64x128xf32>
    %69 = arith.mulf %68, %65 : vector<64x128xf32>
    %70 = arith.select %67, %65, %69 : vector<64x128xi1>, vector<64x128xf32>
    %c0_30 = arith.constant 0 : index
    %c0_31 = arith.constant 0 : index
    %71 = vector.load %arg7[%c0_30, %c0_31] : memref<1x128xf32, #tpu.memory_space<vmem>>, vector<1x128xf32>
    %72 = vector.shape_cast %71 : vector<1x128xf32> to vector<1x128xf32>
    %73 = vector.broadcast %72 : vector<1x128xf32> to vector<64x128xf32>
    %c2_i32 = arith.constant 2 : i32
    %74 = tpu.dynamic_rotate %70 by %c2_i32 dim 0 : vector<64x128xf32>, i32 -> vector<64x128xf32>
    %c-2_i32 = arith.constant -2 : i32
    %75 = vector.broadcast %c-2_i32 : i32 to vector<64x1xi32>
    %76 = arith.addi %18, %75 : vector<64x1xi32>
    %c0_i32_32 = arith.constant 0 : i32
    %77 = vector.broadcast %c0_i32_32 : i32 to vector<64x1xi32>
    %78 = arith.cmpi sge, %76, %77 : vector<64x1xi32>
    %c-2_i32_33 = arith.constant -2 : i32
    %79 = vector.broadcast %c-2_i32_33 : i32 to vector<64x1xi32>
    %80 = arith.addi %18, %79 : vector<64x1xi32>
    %c16_i32_34 = arith.constant 16 : i32
    %81 = vector.broadcast %c16_i32_34 : i32 to vector<64x1xi32>
    %82 = arith.cmpi slt, %80, %81 : vector<64x1xi32>
    %83 = arith.andi %78, %82 : vector<64x1xi1>
    %cst_35 = arith.constant 0.000000e+00 : f32
    %84 = vector.shape_cast %83 : vector<64x1xi1> to vector<64x1xi1>
    %85 = vector.broadcast %84 : vector<64x1xi1> to vector<64x128xi1>
    %86 = vector.broadcast %cst_35 : f32 to vector<64x128xf32>
    %87 = arith.select %85, %74, %86 : vector<64x128xi1>, vector<64x128xf32>
    %c0_36 = arith.constant 0 : index
    %c0_37 = arith.constant 0 : index
    %c0_38 = arith.constant 0 : index
    %88 = vector.load %arg6[%c0_36, %c0_37, %c0_38] : memref<5x128x128xf32, #tpu.memory_space<vmem>>, vector<1x128x128xf32>
    %89 = vector.shape_cast %88 : vector<1x128x128xf32> to vector<128x128xf32>
    %cst_39 = arith.constant dense<0.000000e+00> : vector<64x128xf32>
    %90 = tpu.matmul %87, %89, %cst_39 {dimension_numbers = #tpu.dot_dimension_numbers<[1], [0], [0], [1], [0, 0, 1, 1], [], []>} : vector<64x128xf32>, vector<128x128xf32>, vector<64x128xf32> -> vector<64x128xf32>
    %91 = arith.addf %73, %90 : vector<64x128xf32>
    %c1_i32_40 = arith.constant 1 : i32
    %92 = tpu.dynamic_rotate %70 by %c1_i32_40 dim 0 : vector<64x128xf32>, i32 -> vector<64x128xf32>
    %c-1_i32_41 = arith.constant -1 : i32
    %93 = vector.broadcast %c-1_i32_41 : i32 to vector<64x1xi32>
    %94 = arith.addi %18, %93 : vector<64x1xi32>
    %c0_i32_42 = arith.constant 0 : i32
    %95 = vector.broadcast %c0_i32_42 : i32 to vector<64x1xi32>
    %96 = arith.cmpi sge, %94, %95 : vector<64x1xi32>
    %c-1_i32_43 = arith.constant -1 : i32
    %97 = vector.broadcast %c-1_i32_43 : i32 to vector<64x1xi32>
    %98 = arith.addi %18, %97 : vector<64x1xi32>
    %c16_i32_44 = arith.constant 16 : i32
    %99 = vector.broadcast %c16_i32_44 : i32 to vector<64x1xi32>
    %100 = arith.cmpi slt, %98, %99 : vector<64x1xi32>
    %101 = arith.andi %96, %100 : vector<64x1xi1>
    %cst_45 = arith.constant 0.000000e+00 : f32
    %102 = vector.shape_cast %101 : vector<64x1xi1> to vector<64x1xi1>
    %103 = vector.broadcast %102 : vector<64x1xi1> to vector<64x128xi1>
    %104 = vector.broadcast %cst_45 : f32 to vector<64x128xf32>
    %105 = arith.select %103, %92, %104 : vector<64x128xi1>, vector<64x128xf32>
    %c1 = arith.constant 1 : index
    %c0_46 = arith.constant 0 : index
    %c0_47 = arith.constant 0 : index
    %106 = vector.load %arg6[%c1, %c0_46, %c0_47] : memref<5x128x128xf32, #tpu.memory_space<vmem>>, vector<1x128x128xf32>
    %107 = vector.shape_cast %106 : vector<1x128x128xf32> to vector<128x128xf32>
    %cst_48 = arith.constant dense<0.000000e+00> : vector<64x128xf32>
    %108 = tpu.matmul %105, %107, %cst_48 {dimension_numbers = #tpu.dot_dimension_numbers<[1], [0], [0], [1], [0, 0, 1, 1], [], []>} : vector<64x128xf32>, vector<128x128xf32>, vector<64x128xf32> -> vector<64x128xf32>
    %109 = arith.addf %91, %108 : vector<64x128xf32>
    %c2 = arith.constant 2 : index
    %c0_49 = arith.constant 0 : index
    %c0_50 = arith.constant 0 : index
    %110 = vector.load %arg6[%c2, %c0_49, %c0_50] : memref<5x128x128xf32, #tpu.memory_space<vmem>>, vector<1x128x128xf32>
    %111 = vector.shape_cast %110 : vector<1x128x128xf32> to vector<128x128xf32>
    %cst_51 = arith.constant dense<0.000000e+00> : vector<64x128xf32>
    %112 = tpu.matmul %70, %111, %cst_51 {dimension_numbers = #tpu.dot_dimension_numbers<[1], [0], [0], [1], [0, 0, 1, 1], [], []>} : vector<64x128xf32>, vector<128x128xf32>, vector<64x128xf32> -> vector<64x128xf32>
    %113 = arith.addf %109, %112 : vector<64x128xf32>
    %c63_i32_52 = arith.constant 63 : i32
    %114 = tpu.dynamic_rotate %70 by %c63_i32_52 dim 0 : vector<64x128xf32>, i32 -> vector<64x128xf32>
    %c1_i32_53 = arith.constant 1 : i32
    %115 = vector.broadcast %c1_i32_53 : i32 to vector<64x1xi32>
    %116 = arith.addi %18, %115 : vector<64x1xi32>
    %c0_i32_54 = arith.constant 0 : i32
    %117 = vector.broadcast %c0_i32_54 : i32 to vector<64x1xi32>
    %118 = arith.cmpi sge, %116, %117 : vector<64x1xi32>
    %c1_i32_55 = arith.constant 1 : i32
    %119 = vector.broadcast %c1_i32_55 : i32 to vector<64x1xi32>
    %120 = arith.addi %18, %119 : vector<64x1xi32>
    %c16_i32_56 = arith.constant 16 : i32
    %121 = vector.broadcast %c16_i32_56 : i32 to vector<64x1xi32>
    %122 = arith.cmpi slt, %120, %121 : vector<64x1xi32>
    %123 = arith.andi %118, %122 : vector<64x1xi1>
    %cst_57 = arith.constant 0.000000e+00 : f32
    %124 = vector.shape_cast %123 : vector<64x1xi1> to vector<64x1xi1>
    %125 = vector.broadcast %124 : vector<64x1xi1> to vector<64x128xi1>
    %126 = vector.broadcast %cst_57 : f32 to vector<64x128xf32>
    %127 = arith.select %125, %114, %126 : vector<64x128xi1>, vector<64x128xf32>
    %c3 = arith.constant 3 : index
    %c0_58 = arith.constant 0 : index
    %c0_59 = arith.constant 0 : index
    %128 = vector.load %arg6[%c3, %c0_58, %c0_59] : memref<5x128x128xf32, #tpu.memory_space<vmem>>, vector<1x128x128xf32>
    %129 = vector.shape_cast %128 : vector<1x128x128xf32> to vector<128x128xf32>
    %cst_60 = arith.constant dense<0.000000e+00> : vector<64x128xf32>
    %130 = tpu.matmul %127, %129, %cst_60 {dimension_numbers = #tpu.dot_dimension_numbers<[1], [0], [0], [1], [0, 0, 1, 1], [], []>} : vector<64x128xf32>, vector<128x128xf32>, vector<64x128xf32> -> vector<64x128xf32>
    %131 = arith.addf %113, %130 : vector<64x128xf32>
    %c62_i32 = arith.constant 62 : i32
    %132 = tpu.dynamic_rotate %70 by %c62_i32 dim 0 : vector<64x128xf32>, i32 -> vector<64x128xf32>
    %c2_i32_61 = arith.constant 2 : i32
    %133 = vector.broadcast %c2_i32_61 : i32 to vector<64x1xi32>
    %134 = arith.addi %18, %133 : vector<64x1xi32>
    %c0_i32_62 = arith.constant 0 : i32
    %135 = vector.broadcast %c0_i32_62 : i32 to vector<64x1xi32>
    %136 = arith.cmpi sge, %134, %135 : vector<64x1xi32>
    %c2_i32_63 = arith.constant 2 : i32
    %137 = vector.broadcast %c2_i32_63 : i32 to vector<64x1xi32>
    %138 = arith.addi %18, %137 : vector<64x1xi32>
    %c16_i32_64 = arith.constant 16 : i32
    %139 = vector.broadcast %c16_i32_64 : i32 to vector<64x1xi32>
    %140 = arith.cmpi slt, %138, %139 : vector<64x1xi32>
    %141 = arith.andi %136, %140 : vector<64x1xi1>
    %cst_65 = arith.constant 0.000000e+00 : f32
    %142 = vector.shape_cast %141 : vector<64x1xi1> to vector<64x1xi1>
    %143 = vector.broadcast %142 : vector<64x1xi1> to vector<64x128xi1>
    %144 = vector.broadcast %cst_65 : f32 to vector<64x128xf32>
    %145 = arith.select %143, %132, %144 : vector<64x128xi1>, vector<64x128xf32>
    %c4 = arith.constant 4 : index
    %c0_66 = arith.constant 0 : index
    %c0_67 = arith.constant 0 : index
    %146 = vector.load %arg6[%c4, %c0_66, %c0_67] : memref<5x128x128xf32, #tpu.memory_space<vmem>>, vector<1x128x128xf32>
    %147 = vector.shape_cast %146 : vector<1x128x128xf32> to vector<128x128xf32>
    %cst_68 = arith.constant dense<0.000000e+00> : vector<64x128xf32>
    %148 = tpu.matmul %145, %147, %cst_68 {dimension_numbers = #tpu.dot_dimension_numbers<[1], [0], [0], [1], [0, 0, 1, 1], [], []>} : vector<64x128xf32>, vector<128x128xf32>, vector<64x128xf32> -> vector<64x128xf32>
    %149 = arith.addf %131, %148 : vector<64x128xf32>
    %cst_69 = arith.constant 0.000000e+00 : f32
    %150 = vector.broadcast %cst_69 : f32 to vector<64x128xf32>
    %151 = arith.cmpf ogt, %149, %150 : vector<64x128xf32>
    %cst_70 = arith.constant 0.00999999977 : f32
    %152 = vector.broadcast %cst_70 : f32 to vector<64x128xf32>
    %153 = arith.mulf %152, %149 : vector<64x128xf32>
    %154 = arith.select %151, %149, %153 : vector<64x128xi1>, vector<64x128xf32>
    %155 = vector.shape_cast %154 : vector<64x128xf32> to vector<4x16x128xf32>
    %c0_71 = arith.constant 0 : index
    %c0_72 = arith.constant 0 : index
    %c0_73 = arith.constant 0 : index
    %156 = vector.load %arg8[%c0_71, %c0_72, %c0_73] : memref<4x16x256xf32, #tpu.memory_space<vmem>>, vector<4x16x128xf32>
    tpu.vector_store %arg8[%c0_71, %c0_72, %c0_73], %155 {strides = array<i32>} : memref<4x16x256xf32, #tpu.memory_space<vmem>>, vector<4x16x128xf32>,
    return
  }
  func.func @transform_0(%arg0: i32) -> (i32, i32, i32) {
    %c0_i32 = arith.constant 0 : i32
    %c0_i32_0 = arith.constant 0 : i32
    %c0_i32_1 = arith.constant 0 : i32
    return %arg0, %c0_i32, %c0_i32_0 : i32, i32, i32
  }
  func.func @transform_1(%arg0: i32) -> (i32, i32) {
    %c0_i32 = arith.constant 0 : i32
    %c0_i32_0 = arith.constant 0 : i32
    %c0_i32_1 = arith.constant 0 : i32
    return %c0_i32, %c0_i32_0 : i32, i32
  }
  func.func @transform_2(%arg0: i32) -> (i32, i32) {
    %c0_i32 = arith.constant 0 : i32
    %c0_i32_0 = arith.constant 0 : i32
    %c0_i32_1 = arith.constant 0 : i32
    return %c0_i32, %c0_i32_0 : i32, i32
  }
  func.func @transform_3(%arg0: i32) -> (i32, i32) {
    %c0_i32 = arith.constant 0 : i32
    %c0_i32_0 = arith.constant 0 : i32
    %c0_i32_1 = arith.constant 0 : i32
    return %c0_i32, %c0_i32_0 : i32, i32
  }
  func.func @transform_4(%arg0: i32) -> (i32, i32) {
    %c0_i32 = arith.constant 0 : i32
    %c0_i32_0 = arith.constant 0 : i32
    %c0_i32_1 = arith.constant 0 : i32
    return %c0_i32, %c0_i32_0 : i32, i32
  }
  func.func @transform_5(%arg0: i32) -> (i32, i32, i32) {
    %c0_i32 = arith.constant 0 : i32
    %c0_i32_0 = arith.constant 0 : i32
    %c0_i32_1 = arith.constant 0 : i32
    %c0_i32_2 = arith.constant 0 : i32
    return %c0_i32, %c0_i32_0, %c0_i32_1 : i32, i32, i32
  }
  func.func @transform_6(%arg0: i32) -> (i32, i32) {
    %c0_i32 = arith.constant 0 : i32
    %c0_i32_0 = arith.constant 0 : i32
    %c0_i32_1 = arith.constant 0 : i32
    return %c0_i32, %c0_i32_0 : i32, i32
  }
  func.func @transform_7(%arg0: i32) -> (i32, i32, i32) {
    %c0_i32 = arith.constant 0 : i32
    %c0_i32_0 = arith.constant 0 : i32
    %c0_i32_1 = arith.constant 0 : i32
    return %arg0, %c0_i32, %c0_i32_0 : i32, i32, i32
  }
}

</mosaic_0001>

<bundles_post_ra>
// kernel: inception_forward.1
= control target key start
LH: loop header
LB: loop body
LE: loop exit
PB: predicated region body
PF: predicated region fallthrough
CT: control target
= control target key end

     0   :  { %s2430_s24 = smov 0   ;;  %s3166_s0 = inlined_call_operand.vmem [shape: f32[8,16,4], index: 0, kind: input, shape index: {}]   ;;  %s3167_s1 = inlined_call_operand.vmem [shape: f32[4,128], index: 1, kind: input, shape index: {}]   ;;  %s3168_s2 = inlined_call_operand.vmem [shape: f32[1,128], index: 2, kind: input, shape index: {}]   ;;  %s3169_s3 = inlined_call_operand.vmem [shape: f32[4,128], index: 3, kind: input, shape index: {}]   ;;  %s3170_s4 = inlined_call_operand.vmem [shape: f32[1,128], index: 4, kind: input, shape index: {}]   ;;  %s3171_s5 = inlined_call_operand.vmem [shape: f32[5,128,128], index: 5, kind: input, shape index: {}]   ;;  %s3172_s6 = inlined_call_operand.vmem [shape: f32[1,128], index: 6, kind: input, shape index: {}]   ;;  %s3173_s7 = inlined_call_operand.vmem [shape: f32[8,16,256], index: 7, kind: output, shape index: {}]  }
   0x1 LB: > { %s1840_s25 = sadd.s32 4294967295, %s2388_s24   ;;  %p1844_p0 = scmp.ge.s32.totalorder %s2388_s24, 1  ;;  %s2388_s24 = sphi %s2430_s24, %s17_s24  }
   0x2   : > { %p239_p1 = scmp.lt.s32.totalorder %s2388_s24, 3 }
   0x4   : > { %p240_p2 = pnand %p1844_p0, %p239_p1 }
   0x5   : > { %s1845_s28 = sshll.u32 (!%p240_p2), %s1840_s25, 2 }
   0x6   : > { %243 = sbr.rel (%p240_p2) target bundleno = 515 (0x203), region = 48  ;;  %p274_p3 = scmp.lt.s32.totalorder (!%p240_p2), %s1845_s28, 7 }
   0xb   : > { %vm595_vm0 = vcmask 1043456   ;;  %v736_v0 = vld [vmem:[%s3167_s1] sm:$0xf]  ;;  %v295_v1 = vlaneseq  ;;  %v2447_v3 = vld [vmem:[%s3171_s5 + $0x78] sm:$0xff]  ;;  %s3177_s28 = smov (!%p274_p3, %s1845_s28), 7  ;;  %vm570_vm1 = vcmask 31744  }
   0xc   : > { %2108 = vmatprep.subr.msk.mxu1 %vm595_vm0, %v736_v0  ;;  %v562_v2 = vld [vmem:[%s3169_s3] sm:$0xf]  ;;  %v1891_v4 = vld [vmem:[%s3171_s5 + $0xf8] sm:$0xff]  ;;  %s1954_s12 = sshll.u32 %s3177_s28, 4  ;;  %v1890_v14 = vld [vmem:[%s3171_s5 + $0xf0] sm:$0xff]  ;;  %s1955_s8 = sshll.u32 %s3177_s28, 5 }
   0xd   : > { %2109 = vmatpush3.msk.msra.mxu1 %vm595_vm0, %v736_v0  ;;  %2094 = vmatprep.subr.msk.mxu0 %vm595_vm0, %v562_v2  ;;  %v2452_v5 = vshrl.u32 %v295_v1, 7  ;;  %s2465_s15 = scalar_lea.vmem %s3166_s0, %s1954_s12  ;;  %v1889_v21 = vld [vmem:[%s3171_s5 + $0xe8] sm:$0xff]  ;;  %v1888_v25 = vld [vmem:[%s3171_s5 + $0xe0] sm:$0xff]  ;;  %v1887_v32 = vld [vmem:[%s3171_s5 + $0xd8] sm:$0xff]  ;;  %s2893_s14 = scalar_lea.vmem %s3173_s7, %s1955_s8 }
   0xe   : > { %2095 = vmatpush3.msk.msra.mxu0 %vm595_vm0, %v562_v2  ;;  %2166 = vmatprep.subr.mxu1 %v1891_v4  ;;  %v2468_v8 = vld [vmem:[%s2465_s15] sm:$0xff]  ;;  %v2471_v9 = vld [vmem:[%s2465_s15 + $0x8] sm:$0xff]  ;;  %v2474_v10 = vld [vmem:[%s2465_s15 + $0x10] sm:$0xff] }
   0xf   : > { %v308_v6 = vand.u32 15, %v2452_v5  ;;  %2122 = vmatprep.subr.mxu0 %v2447_v3  ;;  %v2460_v7 = vadd.s32 8, %v2452_v5  ;;  %v473_v11 = vrot.slane %v2468_v8, 1  ;;  %2110 = vmatprep.mubr.msk.f32.mxu1 %vm570_vm1, %v2468_v8  ;;  %v474_v12 = vrot.slane %v2471_v9, 1  ;;  %v2497_v19 = vld [vmem:[%s2465_s15 + $0x18] sm:$0xff]  ;;  %v2507_v22 = vld [vmem:[%s2465_s15 + $0x20] sm:$0xff] }
  0x10   : > { %v400_v15 = vrot.slane %v2468_v8, 7  ;;  %2111 = vmatmul.mubr.msk.f32.vlgmr.msra.gmra.mxu1 %vm570_vm1, %v2471_v9  ;;  %v475_v16 = vrot.slane %v2474_v10, 1  ;;  %vm481_vm2 = vcmp.lt.s32.totalorder %v2452_v5, 7  ;;  %v401_v18 = vrot.slane %v2471_v9, 7  ;;  %v2500_v20 = vld [vmem:[%s2465_s15 + $0x38] sm:$0xff]  ;;  %v2535_v29 = vld [vmem:[%s2465_s15 + $0x28] sm:$0xff] }
  0x11   : > { %v2482_v13 = vadd.s32 4294967295, %v308_v6  ;;  %v315_v17 = vand.u32 15, %v2460_v7  ;;  %2113 = vmatprep.mubr.msk.f32.mxu1 %vm570_vm1, %v2474_v10  ;;  %vm408_vm3 = vcmp.lt.s32.totalorder %v2452_v5, 1  ;;  %2167 = vmatpush3.msra.mxu1 %v1891_v4  ;;  %v407_v23 = vrot.slane %v2500_v20, 7  ;;  %v2547_v33 = vld [vmem:[%s2465_s15 + $0x30] sm:$0xff]  ;;  %v993_v41 = vld [vmem:[%s3171_s5 + $0x68] sm:$0xff] }
  0x12   : > { %2168 = vmatprep.subr.mxu1 %v1890_v14  ;;  %v488_v24 = vsel %vm481_vm2, %v473_v11, %v474_v12  ;;  %v487_v27 = vsel %vm481_vm2, %v474_v12, %v475_v16  ;;  %v415_v31 = vsel %vm408_vm3, %v400_v15, %v401_v18  ;;  %v1886_v36 = vld [vmem:[%s3171_s5 + $0xd0] sm:$0xff]  ;;  %v992_v42 = vld [vmem:[%s3171_s5 + $0x60] sm:$0xff]  ;;  %v991_v43 = vld [vmem:[%s3171_s5 + $0x58] sm:$0xff]  ;;  %v2582_v45 = vadd.s32 16, %v2452_v5 }
  0x13   : > { %vm425_vm4 = vcmp.ge.s32.totalorder %v2482_v13, 0  ;;  %2169 = vmatpush3.msra.mxu1 %v1890_v14  ;;  %v416_v26 = vsel %vm408_vm3, %v407_v23, %v400_v15  ;;  %v2530_v28 = vadd.s32 1, %v315_v17  ;;  %v994_v40 = vld [vmem:[%s3171_s5 + $0x70] sm:$0xff]  ;;  %v2585_v46 = vadd.s32 24, %v2452_v5  ;;  %v989_v63 = vld [vmem:[%s3171_s5 + $0x48] sm:$0xff]  ;;  %v988_v15 = vld [vmem:[%s3171_s5 + $0x40] sm:$0xff] }
  0x14   : > { %2114 = vmatmul.mubr.msk.f32.gmra.mxu1 %vm570_vm1, %v2497_v19  ;;  %2170 = vmatprep.subr.mxu1 %v1889_v21  ;;  %v465_v30 = vsel %vm425_vm4, %v416_v26, -inf  ;;  %v990_v44 = vld [vmem:[%s3171_s5 + $0x50] sm:$0xff]  ;;  %v402_v47 = vrot.slane %v2474_v10, 7  ;;  %v322_v48 = vand.u32 15, %v2582_v45  ;;  %v476_v49 = vrot.slane %v2497_v19, 1  ;;  %v1885_v0 = vld [vmem:[%s3171_s5 + $0xc8] sm:$0xff] }
  0x15   : > { %2116 = vmatprep.mubr.msk.f32.mxu1 %vm570_vm1, %v2507_v22  ;;  %2171 = vmatpush3.msra.mxu1 %v1889_v21  ;;  %v546_v34 = vmax.f32 %v465_v30, %v488_v24  ;;  %vm507_vm5 = vcmp.lt.s32.totalorder %v2530_v28, 16  ;;  %v477_v50 = vrot.slane %v2507_v22, 1  ;;  %v329_v51 = vand.u32 15, %v2585_v46  ;;  %v1926_v13 = vld [vmem:[%s3171_s5 + $0x1f0] sm:$0xff]  ;;  %v1945_v28 = vld [vmem:[%s3171_s5 + $0x268] sm:$0xff] }
  0x16   : > { %2172 = vmatprep.subr.mxu1 %v1888_v25  ;;  %v539_v35 = vsel %vm507_vm5, %v487_v27, -inf  ;;  %v403_v52 = vrot.slane %v2497_v19, 7  ;;  %v404_v53 = vrot.slane %v2507_v22, 7  ;;  %v2596_v54 = vadd.s32 4294967295, %v322_v48 }
  0x17   : > { %2173 = vmatpush3.msra.mxu1 %v1888_v25  ;;  %v554_v37 = vmax.f32 %v2468_v8, %v546_v34  ;;  %v547_v38 = vmax.f32 %v415_v31, %v539_v35  ;;  %v2599_v55 = vadd.s32 32, %v2452_v5  ;;  %v405_v56 = vrot.slane %v2535_v29, 7  ;;  %v1883_v34 = vld [vmem:[%s3171_s5 + $0xb8] sm:$0xff]  ;;  %v984_v8 = vld [vmem:[%s3171_s5 + $0x20] sm:$0xff] }
  0x18   : > { %2117 = vmatmul.mubr.msk.f32.gmra.mxu1 %vm570_vm1, %v2535_v29  ;;  %2174 = vmatprep.subr.mxu1 %v1887_v32  ;;  %v478_v57 = vrot.slane %v2535_v29, 1  ;;  %v2605_v58 = vadd.s32 1, %v329_v51  ;;  %v2608_v59 = vadd.s32 40, %v2452_v5  ;;  %v479_v60 = vrot.slane %v2547_v33, 1 }
  0x19   : > { %2119 = vmatprep.mubr.msk.f32.mxu1 %vm570_vm1, %v2547_v33  ;;  %2175 = vmatpush3.msra.mxu1 %v1887_v32  ;;  %v555_v39 = vmax.f32 %v2471_v9, %v547_v38  ;;  %v414_v61 = vsel %vm408_vm3, %v401_v18, %v402_v47  ;;  %vm427_vm6 = vcmp.ge.s32.totalorder %v2596_v54, 0  ;;  %v336_v62 = vand.u32 15, %v2599_v55  ;;  %v987_v32 = vld [vmem:[%s3171_s5 + $0x38] sm:$0xff]  ;;  %v1909_v55 = vld [vmem:[%s3171_s5 + $0x168] sm:$0xff] }
  0x1a   : > { %2096 = vmatprep.mubr.msk.f32.mxu0 %vm570_vm1, %v554_v37  ;;  %2176 = vmatprep.subr.mxu1 %v1886_v36  ;;  %v467_v1 = vsel %vm427_vm6, %v414_v61, -inf  ;;  %v486_v2 = vsel %vm481_vm2, %v475_v16, %v476_v49  ;;  %vm509_vm7 = vcmp.lt.s32.totalorder %v2605_v58, 16  ;;  %v413_v9 = vsel %vm408_vm3, %v402_v47, %v403_v52  ;;  %v1884_v16 = vld [vmem:[%s3171_s5 + $0xc0] sm:$0xff]  ;;  %v1943_v58 = vld [vmem:[%s3171_s5 + $0x258] sm:$0xff] }
  0x1b   : > { %2177 = vmatpush3.msra.mxu1 %v1886_v36  ;;  %2097 = vmatmul.mubr.msk.f32.vlgmr.msra.gmra.mxu0 %vm570_vm1, %v555_v39  ;;  %v548_v4 = vmax.f32 %v467_v1, %v486_v2  ;;  %v2638_v14 = vadd.s32 4294967295, %v336_v62  ;;  %v343_v21 = vand.u32 15, %v2608_v59  ;;  %v2648_v24 = vadd.s32 48, %v2452_v5  ;;  %v983_v2 = vld [vmem:[%s3171_s5 + $0x18] sm:$0xff] }
  0x1c   : > { %2120 = vmatmul.mubr.msk.f32.gmra.mxu1 %vm570_vm1, %v2500_v20  ;;  %2123 = vmatpush3.msra.mxu0 %v2447_v3  ;;  %v485_v3 = vsel %vm481_vm2, %v476_v49, %v477_v50  ;;  %v2651_v25 = vadd.s32 56, %v2452_v5  ;;  %v406_v26 = vrot.slane %v2547_v33, 7  ;;  %v412_v30 = vsel %vm408_vm3, %v403_v52, %v404_v53  ;;  %v1881_v52 = vld [vmem:[%s3171_s5 + $0xa8] sm:$0xff] }
  0x1d   : > { %2124 = vmatprep.subr.mxu0 %v994_v40  ;;  %2178 = vmatprep.subr.mxu1 %v1885_v0  ;;  %v541_v12 = vsel %vm509_vm7, %v485_v3, -inf  ;;  %v556_v27 = vmax.f32 %v2474_v10, %v548_v4  ;;  %vm429_vm8 = vcmp.ge.s32.totalorder %v2638_v14, 0  ;;  %v480_v31 = vrot.slane %v2500_v20, 1 }
  0x1e   : > { %2125 = vmatpush3.msra.mxu0 %v994_v40  ;;  %2179 = vmatpush3.msra.mxu1 %v1885_v0  ;;  %v549_v18 = vmax.f32 %v413_v9, %v541_v12  ;;  %v469_v10 = vsel %vm429_vm8, %v412_v30, -inf  ;;  %v484_v36 = vsel %vm481_vm2, %v477_v50, %v478_v57  ;;  %v483_v38 = vsel %vm481_vm2, %v478_v57, %v479_v60  ;;  %v985_v50 = vld [vmem:[%s3171_s5 + $0x28] sm:$0xff]  ;;  %v982_v12 = vld [vmem:[%s3171_s5 + $0x10] sm:$0xff] }
  0x1f   : > { %2126 = vmatprep.subr.mxu0 %v993_v41  ;;  %2180 = vmatprep.subr.mxu1 %v1884_v16  ;;  %v550_v37 = vmax.f32 %v469_v10, %v484_v36  ;;  %v2675_v39 = vadd.s32 1, %v343_v21  ;;  %v350_v40 = vand.u32 15, %v2648_v24  ;;  %v410_v47 = vsel %vm408_vm3, %v405_v56, %v406_v26 }
  0x20   : > { %2127 = vmatpush3.msra.mxu0 %v993_v41  ;;  %2181 = vmatpush3.msra.mxu1 %v1884_v16  ;;  %v557_v35 = vmax.f32 %v2497_v19, %v549_v18  ;;  %v986_v19 = vld [vmem:[%s3171_s5 + $0x30] sm:$0xff]  ;;  %v980_v16 = vld [vmem:[%s3171_s5] sm:$0xff]  ;;  %vm915_vm15 = vcmp.lt.s32.totalorder %v2452_v5, 2  ;;  %v1567_v7 = vadd.s32 2, %v329_v51 }
  0x21   : > { %2128 = vmatprep.subr.mxu0 %v992_v42  ;;  %2099 = vmatprep.mubr.msk.f32.mxu0 %vm570_vm1, %v556_v27  ;;  %v1882_v41 = vld [vmem:[%s3171_s5 + $0xb0] sm:$0xff]  ;;  %vm511_vm9 = vcmp.lt.s32.totalorder %v2675_v39, 16  ;;  %v2694_v49 = vadd.s32 4294967295, %v350_v40  ;;  %v1876_v18 = vld [vmem:[%s3171_s5 + $0x80] sm:$0xff]  ;;  %v2769_v27 = vld [vmem:[%s3171_s5 + $0x1f8] sm:$0xff] }
  0x22   : > { %2129 = vmatpush3.msra.mxu0 %v992_v42  ;;  %2182 = vmatprep.subr.mxu1 %v1883_v34  ;;  %v411_v42 = vsel %vm408_vm3, %v404_v53, %v405_v56  ;;  %v482_v53 = vsel %vm481_vm2, %v479_v60, %v480_v31  ;;  %v489_v56 = vsel %vm481_vm2, %v480_v31, %v473_v11  ;;  %v1880_v11 = vld [vmem:[%s3171_s5 + $0xa0] sm:$0xff] }
  0x23   : > { %2130 = vmatprep.subr.mxu0 %v991_v43  ;;  %2100 = vmatmul.mubr.msk.f32.gmra.mxu0 %vm570_vm1, %v557_v35  ;;  %vm431_vm10 = vcmp.ge.s32.totalorder %v2694_v49, 0  ;;  %v1861_v31 = vld [vmem:[%s3168_s2] ss:$0 sm:$0xff] }
  0x24   : > { %2131 = vmatpush3.msra.mxu0 %v991_v43  ;;  %v357_v43 = vand.u32 15, %v2651_v25  ;;  %2183 = vmatpush3.msra.mxu1 %v1883_v34  ;;  %v471_v60 = vsel %vm431_vm10, %v410_v47, -inf }
  0x25   : > { %2132 = vmatprep.subr.mxu0 %v990_v44  ;;  %2184 = vmatprep.subr.mxu1 %v1882_v41 }
  0x26   : > { %2133 = vmatpush3.msra.mxu0 %v990_v44  ;;  %v558_v44 = vmax.f32 %v2507_v22, %v550_v37  ;;  %v543_v22 = vsel %vm511_vm9, %v483_v38, -inf  ;;  %v2712_v57 = vadd.s32 1, %v357_v43  ;;  %2185 = vmatpush3.msra.mxu1 %v1882_v41 }
  0x27   : > { %2134 = vmatprep.subr.mxu0 %v989_v63  ;;  %v551_v61 = vmax.f32 %v411_v42, %v543_v22  ;;  %2186 = vmatprep.subr.mxu1 %v1881_v52 }
  0x28   : > { %2135 = vmatpush3.msra.mxu0 %v989_v63  ;;  %v409_v63 = vsel %vm408_vm3, %v406_v26, %v407_v23  ;;  %2102 = vmatprep.mubr.msk.f32.mxu0 %vm570_vm1, %v558_v44  ;;  %vm3174_vm11 = vcmp.lt.s32.totalorder %v2712_v57, 16  ;;  %v552_v23 = vmax.f32 %v471_v60, %v482_v53  ;;  %v2764_v26 = vld [vmem:[%s3171_s5 + $0x178] sm:$0xff]  ;;  %v924_v44 = vadd.s32 4294967294, %v308_v6 }
  0x29   : > { %2136 = vmatprep.subr.mxu0 %v988_v15  ;;  %v559_v0 = vmax.f32 %v2535_v29, %v551_v61  ;;  %v545_v1 = vsel %vm3174_vm11, %v489_v56, -inf  ;;  %2187 = vmatpush3.msra.mxu1 %v1881_v52  ;;  %v1879_v29 = vld [vmem:[%s3171_s5 + $0x98] sm:$0xff] }
  0x2a   : > { %2137 = vmatpush3.msra.mxu0 %v988_v15  ;;  %v553_v3 = vmax.f32 %v409_v63, %v545_v1  ;;  %2188 = vmatprep.subr.mxu1 %v1880_v11  ;;  %v560_v4 = vmax.f32 %v2547_v33, %v552_v23  ;;  %v1878_v15 = vld [vmem:[%s3171_s5 + $0x90] sm:$0xff]  ;;  %v1877_v33 = vld [vmem:[%s3171_s5 + $0x88] sm:$0xff]  ;;  %vm932_vm0 = vcmp.ge.s32.totalorder %v924_v44, 0 }
  0x2b   : > { %2138 = vmatprep.subr.mxu0 %v987_v32  ;;  %2103 = vmatmul.mubr.msk.f32.gmra.mxu0 %vm570_vm1, %v559_v0 }
  0x2c   : > { %2139 = vmatpush3.msra.mxu0 %v987_v32  ;;  %2189 = vmatpush3.msra.mxu1 %v1880_v11  ;;  %v561_v9 = vmax.f32 %v2500_v20, %v553_v3  ;;  %v981_v20 = vld [vmem:[%s3171_s5 + $0x8] sm:$0xff] }
  0x2d   : > { %2140 = vmatprep.subr.mxu0 %v986_v19  ;;  %2105 = vmatprep.mubr.msk.f32.mxu0 %vm570_vm1, %v560_v4 }
  0x2e   : > { %2141 = vmatpush3.msra.mxu0 %v986_v19  ;;  %2190 = vmatprep.subr.mxu1 %v1879_v29 }
  0x2f   : > { %2142 = vmatprep.subr.mxu0 %v985_v50  ;;  %2106 = vmatmul.mubr.msk.f32.gmra.mxu0 %vm570_vm1, %v561_v9 }
  0x30   : > { %2143 = vmatpush3.msra.mxu0 %v985_v50  ;;  %2191 = vmatpush3.msra.mxu1 %v1879_v29 }
  0x31   : > { %2144 = vmatprep.subr.mxu0 %v984_v8  ;;  %2192 = vmatprep.subr.mxu1 %v1878_v15 }
  0x32   : > { %2145 = vmatpush3.msra.mxu0 %v984_v8  ;;  %2193 = vmatpush3.msra.mxu1 %v1878_v15  ;;  %v926_v8 = vadd.s32 4294967294, %v322_v48 }
  0x33   : > { %2146 = vmatprep.subr.mxu0 %v983_v2  ;;  %2194 = vmatprep.subr.mxu1 %v1877_v33 }
  0x34   : > { %2147 = vmatpush3.msra.mxu0 %v983_v2  ;;  %2195 = vmatpush3.msra.mxu1 %v1877_v33 }
  0x35   : > { %2148 = vmatprep.subr.mxu0 %v982_v12  ;;  %2196 = vmatprep.subr.mxu1 %v1876_v18 }
  0x36   : > { %2149 = vmatpush3.msra.mxu0 %v982_v12  ;;  %2197 = vmatpush3.msra.mxu1 %v1876_v18 }
  0x37   : > { %2150 = vmatprep.subr.mxu0 %v981_v20  ;;  %2254 = vmatprep.subr.mxu1 %v2769_v27 }
  0x38   : > { %2151 = vmatpush3.msra.mxu0 %v981_v20 }
  0x39   : > { %2152 = vmatprep.subr.mxu0 %v980_v16 }
  0x3a   : > { %2153 = vmatpush3.msra.mxu0 %v980_v16 }
  0x3b   : > { %2210 = vmatprep.subr.mxu0 %v2764_v26 }
  0xd0   : > { %v2112_v30 = vpop.f32.mrf.mxu1 }
  0xd1   : > { %v843_v34 = vadd.f32 %v2112_v30, %v1861_v31 }
  0xd2   : > { %v837_v32 = vpop.f32.mrf.mxu1 }
  0xd3   : > { %v838_v10 = vadd.f32 %v1861_v31, %v837_v32  ;;  %v885_v37 = vmul.f32 0.01, %v843_v34  ;;  %vm877_vm12 = vcmp.gt.f32.partialorder %v843_v34, 0.0 }
  0xd4   : > { %v2115_v35 = vpop.f32.mrf.mxu1 }
  0xd5   : > { %v884_v41 = vmul.f32 0.01, %v838_v10  ;;  %vm876_vm13 = vcmp.gt.f32.partialorder %v838_v10, 0.0  ;;  %v2778_v47 = vsel %vm877_vm12, %v843_v34, %v885_v37  ;;  %v853_v50 = vadd.f32 %v2115_v35, %v1861_v31 }
  0xd6   : > { %v847_v36 = vpop.f32.mrf.mxu1  ;;  %v908_v60 = vrot.slane %v2778_v47, 6  ;;  %v1110_v12 = vrot.slane %v2778_v47, 7  ;;  %v928_v37 = vadd.s32 4294967294, %v336_v62  ;;  %v1925_v62 = vld [vmem:[%s3171_s5 + $0x1e8] sm:$0xff] }
  0xd7   : > { %v848_v38 = vadd.f32 %v1861_v31, %v847_v36  ;;  %v2780_v53 = vsel %vm876_vm13, %v838_v10, %v884_v41  ;;  %vm879_vm12 = vcmp.gt.f32.partialorder %v853_v50, 0.0  ;;  %v887_v0 = vmul.f32 0.01, %v853_v50  ;;  %v1910_v36 = vld [vmem:[%s3171_s5 + $0x170] sm:$0xff] }
  0xd8   : > { %v2118_v19 = vpop.f32.mrf.mxu1  ;;  %v907_v1 = vrot.slane %v2780_v53, 6  ;;  %v1109_v29 = vrot.slane %v2780_v53, 7 }
  0xd9   : > { %v886_v52 = vmul.f32 0.01, %v848_v38  ;;  %vm878_vm14 = vcmp.gt.f32.partialorder %v848_v38, 0.0  ;;  %v863_v2 = vadd.f32 %v2118_v19, %v1861_v31  ;;  %v2798_v33 = vsel %vm879_vm12, %v853_v50, %v887_v0  ;;  %v1924_v0 = vld [vmem:[%s3171_s5 + $0x1e0] sm:$0xff] }
  0xda   : > { %v857_v42 = vpop.f32.mrf.mxu1  ;;  %v1123_v32 = vsel %vm408_vm3, %v1109_v29, %v1110_v12  ;;  %v1112_v54 = vrot.slane %v2798_v33, 7 }
  0xdb   : > { %v858_v61 = vadd.f32 %v1861_v31, %v857_v42  ;;  %v2786_v23 = vsel %vm878_vm14, %v848_v38, %v886_v52  ;;  %vm934_vm14 = vcmp.ge.s32.totalorder %v926_v8, 0  ;;  %v2098_v34 = vpop.f32.mrf.mxu0  ;;  %v889_v35 = vmul.f32 0.01, %v863_v2 }
  0xdc   : > { %v2121_v22 = vpop.f32.mrf.mxu1  ;;  %v909_v15 = vrot.slane %v2786_v23, 6  ;;  %v1111_v20 = vrot.slane %v2786_v23, 7  ;;  %v1549_v38 = vrot.slane %v2786_v23, 2  ;;  %v1550_v52 = vrot.slane %v2798_v33, 2 }
  0xdd   : > { %v873_v56 = vadd.f32 %v2121_v22, %v1861_v31  ;;  %v888_v9 = vmul.f32 0.01, %v858_v61  ;;  %vm880_vm11 = vcmp.gt.f32.partialorder %v858_v61, 0.0  ;;  %v665_v22 = vpop.f32.mrf.mxu0 }
  0xde   : > { %v867_v63 = vpop.f32.mrf.mxu1  ;;  %v921_v19 = vsel %vm915_vm15, %v908_v60, %v909_v15  ;;  %v1122_v41 = vsel %vm408_vm3, %v1110_v12, %v1111_v20  ;;  %v1121_v8 = vsel %vm408_vm3, %v1111_v20, %v1112_v54  ;;  %v1923_v12 = vld [vmem:[%s3171_s5 + $0x1d8] sm:$0xff] }
  0xdf   : > { %vm883_vm1 = vcmp.gt.f32.partialorder %v873_v56, 0.0  ;;  %v891_v11 = vmul.f32 0.01, %v873_v56  ;;  %v868_v6 = vadd.f32 %v1861_v31, %v867_v63  ;;  %v922_v31 = vsel %vm915_vm15, %v907_v1, %v908_v60  ;;  %v1908_v60 = vld [vmem:[%s3171_s5 + $0x160] sm:$0xff] }
  0xe0   : > { %v2817_v10 = vsel %vm880_vm11, %v858_v61, %v888_v9  ;;  %vm936_vm11 = vcmp.ge.s32.totalorder %v928_v37, 0  ;;  %v1907_v9 = vld [vmem:[%s3171_s5 + $0x158] sm:$0xff] }
  0xe1   : > { %v2789_v3 = vsel %vm883_vm1, %v873_v56, %v891_v11  ;;  %v890_v4 = vmul.f32 0.01, %v868_v6  ;;  %vm882_vm13 = vcmp.gt.f32.partialorder %v868_v6, 0.0  ;;  %v911_v44 = vrot.slane %v2817_v10, 6 }
  0xe2   : > { %v914_v45 = vrot.slane %v2789_v3, 6  ;;  %v1116_v48 = vrot.slane %v2789_v3, 7  ;;  %v1113_v50 = vrot.slane %v2817_v10, 7  ;;  %v1554_v63 = vrot.slane %v2789_v3, 2 }
  0xe3   : > { %v2808_v30 = vsel %vm882_vm13, %v868_v6, %v890_v4 }
  0xe4   : > { %v923_v16 = vsel %vm915_vm15, %v914_v45, %v907_v1  ;;  %v1124_v18 = vsel %vm408_vm3, %v1116_v48, %v1109_v29  ;;  %v1553_v42 = vrot.slane %v2808_v30, 2  ;;  %v930_v1 = vadd.s32 4294967294, %v350_v40 }
  0xe5   : > { %2154 = vmatprep.mubr.msk.f32.mxu0 %vm932_vm0, %v923_v16  ;;  %2198 = vmatprep.mubr.msk.f32.mxu1 %vm425_vm4, %v1124_v18  ;;  %vm881_vm4 = vcmp.gt.f32.partialorder %v863_v2, 0.0  ;;  %v1120_v40 = vsel %vm408_vm3, %v1112_v54, %v1113_v50  ;;  %v913_v14 = vrot.slane %v2808_v30, 6  ;;  %v1115_v18 = vrot.slane %v2808_v30, 7  ;;  %v1904_v54 = vld [vmem:[%s3171_s5 + $0x140] sm:$0xff] }
  0xe6   : > { %2155 = vmatmul.mubr.f32.vlgmr.msra.gmra.mxu0 %v922_v31  ;;  %2199 = vmatmul.mubr.f32.vlgmr.msra.gmra.mxu1 %v1123_v32  ;;  %v2856_v56 = vsel %vm881_vm4, %v863_v2, %v889_v35 }
  0xe7   : > { %2211 = vmatpush3.msra.mxu0 %v2764_v26  ;;  %2255 = vmatpush3.msra.mxu1 %v2769_v27  ;;  %v910_v26 = vrot.slane %v2798_v33, 6  ;;  %v2848_v27 = vld [vmem:[%s3170_s4] ss:$0 sm:$0xff]  ;;  %v1114_v16 = vrot.slane %v2856_v56, 7  ;;  %v916_v49 = vsel %vm915_vm15, %v913_v14, %v914_v45 }
  0xe8   : > { %2157 = vmatprep.mubr.msk.f32.mxu0 %vm934_vm14, %v921_v19  ;;  %2201 = vmatprep.mubr.msk.f32.mxu1 %vm427_vm6, %v1122_v41  ;;  %vm1555_vm6 = vcmp.lt.s32.totalorder %v2452_v5, 6  ;;  %v671_v6 = vadd.f32 %v2098_v34, %v2848_v27  ;;  %v666_v4 = vadd.f32 %v2848_v27, %v665_v22  ;;  %v1905_v41 = vld [vmem:[%s3171_s5 + $0x148] sm:$0xff]  ;;  %v1919_v22 = vld [vmem:[%s3171_s5 + $0x1b8] sm:$0xff]  ;;  %vm1583_vm14 = vcmp.lt.s32.totalorder %v1567_v7, 16 }
  0xe9   : > { %2212 = vmatprep.subr.mxu0 %v1910_v36  ;;  %2256 = vmatprep.subr.mxu1 %v1926_v13  ;;  %v920_v61 = vsel %vm915_vm15, %v909_v15, %v910_v26  ;;  %v2870_v11 = vsel %vm1555_vm6, %v1549_v38, %v1550_v52  ;;  %v2887_v2 = vsel %vm1555_vm6, %v1553_v42, %v1554_v63  ;;  %v912_v15 = vrot.slane %v2856_v56, 6 }
  0xea   : > { %2213 = vmatpush3.msra.mxu0 %v1910_v36  ;;  %2257 = vmatpush3.msra.mxu1 %v1926_v13  ;;  %v919_v24 = vsel %vm915_vm15, %v910_v26, %v911_v44  ;;  %vm705_vm0 = vcmp.gt.f32.partialorder %v671_v6, 0.0  ;;  %v713_v29 = vmul.f32 0.01, %v671_v6  ;;  %vm704_vm1 = vcmp.gt.f32.partialorder %v666_v4, 0.0  ;;  %v1906_v36 = vld [vmem:[%s3171_s5 + $0x150] sm:$0xff] }
  0xeb   : > { %2214 = vmatprep.subr.mxu0 %v1909_v55  ;;  %2258 = vmatprep.subr.mxu1 %v1925_v62  ;;  %v712_v20 = vmul.f32 0.01, %v666_v4  ;;  %v918_v34 = vsel %vm915_vm15, %v911_v44, %v912_v15  ;;  %v1119_v35 = vsel %vm408_vm3, %v1113_v50, %v1114_v16  ;;  %v1922_v13 = vld [vmem:[%s3171_s5 + $0x1d0] sm:$0xff]  ;;  %v917_v37 = vsel %vm915_vm15, %v912_v15, %v913_v14  ;;  %v1920_v44 = vld [vmem:[%s3171_s5 + $0x1c0] sm:$0xff]  ;;  %v1947_v14 = vld [vmem:[%s3171_s5 + $0x278] sm:$0xff] }
  0xec   : > { %2158 = vmatmul.mubr.f32.gmra.mxu0 %v920_v61  ;;  %2202 = vmatmul.mubr.f32.gmra.mxu1 %v1121_v8  ;;  %v721_v31 = vsel %vm705_vm0, %v671_v6, %v713_v29  ;;  %v1118_v19 = vsel %vm408_vm3, %v1114_v16, %v1115_v18  ;;  %v1117_v26 = vsel %vm408_vm3, %v1115_v18, %v1116_v48  ;;  %v1394_v50 = vrot.slane %v2778_v47, 1  ;;  %v1903_v48 = vld [vmem:[%s3171_s5 + $0x138] sm:$0xff]  ;;  %v1902_v61 = vld [vmem:[%s3171_s5 + $0x130] sm:$0xff]  ;;  %v1901_v6 = vld [vmem:[%s3171_s5 + $0x128] sm:$0xff] }
  0xed   : > { %2215 = vmatpush3.msra.mxu0 %v1909_v55  ;;  %2259 = vmatpush3.msra.mxu1 %v1925_v62  ;;  %729 = vst [vmem:[%s2893_s14 + $0x18] sm:$0xff] %v721_v31  ;;  %v720_v32 = vsel %vm704_vm1, %v666_v4, %v712_v20  ;;  %v1921_v55 = vld [vmem:[%s3171_s5 + $0x1c8] sm:$0xff]  ;;  %v1393_v62 = vrot.slane %v2780_v53, 1  ;;  %v1918_v8 = vld [vmem:[%s3171_s5 + $0x1b0] sm:$0xff]  ;;  %v1899_v4 = vld [vmem:[%s3171_s5 + $0x118] sm:$0xff]  ;;  %v1395_v15 = vrot.slane %v2786_v23, 1 }
  0xee   : > { %2160 = vmatprep.mubr.msk.f32.mxu0 %vm936_vm11, %v919_v24  ;;  %2204 = vmatprep.mubr.msk.f32.mxu1 %vm429_vm8, %v1120_v40  ;;  %vm938_vm8 = vcmp.ge.s32.totalorder %v930_v1, 0  ;;  %728 = vst [vmem:[%s2893_s14 + $0x8] sm:$0xff] %v720_v32  ;;  %v1916_v1 = vld [vmem:[%s3171_s5 + $0x1a0] sm:$0xff]  ;;  %v1915_v24 = vld [vmem:[%s3171_s5 + $0x198] sm:$0xff]  ;;  %v1898_v40 = vld [vmem:[%s3171_s5 + $0x110] sm:$0xff]  ;;  %v1396_v31 = vrot.slane %v2798_v33, 1 }
  0xef   : > { %2216 = vmatprep.subr.mxu0 %v1908_v60  ;;  %2260 = vmatprep.subr.mxu1 %v1924_v0  ;;  %v1407_v45 = vsel %vm481_vm2, %v1393_v62, %v1394_v50  ;;  %v1914_v29 = vld [vmem:[%s3171_s5 + $0x190] sm:$0xff]  ;;  %v1896_v20 = vld [vmem:[%s3171_s5 + $0x100] sm:$0xff]  ;;  %v1406_v18 = vsel %vm481_vm2, %v1394_v50, %v1395_v15 }
  0xf0   : > { %2217 = vmatpush3.msra.mxu0 %v1908_v60  ;;  %2261 = vmatpush3.msra.mxu1 %v1924_v0  ;;  %v1917_v60 = vld [vmem:[%s3171_s5 + $0x1a8] sm:$0xff]  ;;  %v1900_v0 = vld [vmem:[%s3171_s5 + $0x120] sm:$0xff]  ;;  %v1405_v32 = vsel %vm481_vm2, %v1395_v15, %v1396_v31 }
  0xf1   : > { %2218 = vmatprep.subr.mxu0 %v1907_v9  ;;  %2262 = vmatprep.subr.mxu1 %v1923_v12  ;;  %v1912_v16 = vld [vmem:[%s3171_s5 + $0x180] sm:$0xff] }
  0xf2   : > { %2161 = vmatmul.mubr.f32.gmra.mxu0 %v918_v34  ;;  %2205 = vmatmul.mubr.f32.gmra.mxu1 %v1119_v35  ;;  %v1946_v34 = vld [vmem:[%s3171_s5 + $0x270] sm:$0xff]  ;;  %v1397_v35 = vrot.slane %v2817_v10, 1 }
  0xf3   : > { %2219 = vmatpush3.msra.mxu0 %v1907_v9  ;;  %2263 = vmatpush3.msra.mxu1 %v1923_v12  ;;  %v1897_v9 = vld [vmem:[%s3171_s5 + $0x108] sm:$0xff] }
  0xf4   : > { %2163 = vmatprep.mubr.msk.f32.mxu0 %vm938_vm8, %v917_v37  ;;  %2207 = vmatprep.mubr.msk.f32.mxu1 %vm431_vm10, %v1118_v19  ;;  %v1913_v12 = vld [vmem:[%s3171_s5 + $0x188] sm:$0xff]  ;;  %v1944_v19 = vld [vmem:[%s3171_s5 + $0x260] sm:$0xff] }
  0xf5   : > { %2220 = vmatprep.subr.mxu0 %v1906_v36  ;;  %2264 = vmatprep.subr.mxu1 %v1922_v13 }
  0xf6   : > { %2221 = vmatpush3.msra.mxu0 %v1906_v36  ;;  %2265 = vmatpush3.msra.mxu1 %v1922_v13  ;;  %v1404_v36 = vsel %vm481_vm2, %v1396_v31, %v1397_v35  ;;  %v1398_v13 = vrot.slane %v2856_v56, 1 }
  0xf7   : > { %2222 = vmatprep.subr.mxu0 %v1905_v41  ;;  %2266 = vmatprep.subr.mxu1 %v1921_v55 }
  0xf8   : > { %2164 = vmatmul.mubr.f32.gmra.mxu0 %v916_v49  ;;  %2208 = vmatmul.mubr.f32.gmra.mxu1 %v1117_v26  ;;  %v1403_v37 = vsel %vm481_vm2, %v1397_v35, %v1398_v13  ;;  %v1938_v35 = vld [vmem:[%s3171_s5 + $0x230] sm:$0xff] }
  0xf9   : > { %2223 = vmatpush3.msra.mxu0 %v1905_v41  ;;  %2267 = vmatpush3.msra.mxu1 %v1921_v55  ;;  %v1399_v41 = vrot.slane %v2808_v30, 1  ;;  %v2101_v55 = vpop.f32.mrf.mxu0 }
  0xfa   : > { %2224 = vmatprep.subr.mxu0 %v1904_v54  ;;  %2242 = vmatprep.mubr.f32.mxu0 %v2780_v53  ;;  %v681_v49 = vadd.f32 %v2101_v55, %v2848_v27 }
  0xfb   : > { %2268 = vmatprep.subr.mxu1 %v1920_v44  ;;  %2286 = vmatprep.mubr.f32.mxu1 %v1407_v45  ;;  %v1402_v26 = vsel %vm481_vm2, %v1398_v13, %v1399_v41 }
  0xfc   : > { %2225 = vmatpush3.msra.mxu0 %v1904_v54  ;;  %2269 = vmatpush3.msra.mxu1 %v1920_v44  ;;  %v1400_v54 = vrot.slane %v2789_v3, 1  ;;  %v675_v44 = vpop.f32.mrf.mxu0  ;;  %vm707_vm3 = vcmp.gt.f32.partialorder %v681_v49, 0.0  ;;  %v715_v50 = vmul.f32 0.01, %v681_v49 }
  0xfd   : > { %2226 = vmatprep.subr.mxu0 %v1903_v48  ;;  %2270 = vmatprep.subr.mxu1 %v1919_v22  ;;  %v676_v45 = vadd.f32 %v2848_v27, %v675_v44  ;;  %v1569_v44 = vadd.s32 2, %v343_v21 }
  0xfe   : > { %2227 = vmatpush3.msra.mxu0 %v1903_v48  ;;  %2271 = vmatpush3.msra.mxu1 %v1919_v22  ;;  %v1401_v48 = vsel %vm481_vm2, %v1399_v41, %v1400_v54  ;;  %v1942_v22 = vld [vmem:[%s3171_s5 + $0x250] sm:$0xff] }
  0xff   : > { %2228 = vmatprep.subr.mxu0 %v1902_v61  ;;  %2272 = vmatprep.subr.mxu1 %v1918_v8  ;;  %v714_v39 = vmul.f32 0.01, %v676_v45  ;;  %vm1585_vm13 = vcmp.lt.s32.totalorder %v1569_v44, 16 }
 0x100   : > { %2229 = vmatpush3.msra.mxu0 %v1902_v61  ;;  %2273 = vmatpush3.msra.mxu1 %v1918_v8  ;;  %v723_v61 = vsel %vm707_vm3, %v681_v49, %v715_v50  ;;  %v1941_v8 = vld [vmem:[%s3171_s5 + $0x248] sm:$0xff]  ;;  %v1934_v49 = vld [vmem:[%s3171_s5 + $0x210] sm:$0xff]  ;;  %v1932_v50 = vld [vmem:[%s3171_s5 + $0x200] sm:$0xff] }
 0x101   : > { %2230 = vmatprep.subr.mxu0 %v1901_v6  ;;  %2274 = vmatprep.subr.mxu1 %v1917_v60  ;;  %731 = vst [vmem:[%s2893_s14 + $0x38] sm:$0xff] %v723_v61 }
 0x102   : > { %2231 = vmatpush3.msra.mxu0 %v1901_v6  ;;  %2275 = vmatpush3.msra.mxu1 %v1917_v60  ;;  %v1547_v6 = vrot.slane %v2780_v53, 2  ;;  %v1551_v60 = vrot.slane %v2817_v10, 2 }
 0x103   : > { %2232 = vmatprep.subr.mxu0 %v1900_v0  ;;  %2276 = vmatprep.subr.mxu1 %v1916_v1 }
 0x104   : > { %2233 = vmatpush3.msra.mxu0 %v1900_v0  ;;  %2277 = vmatpush3.msra.mxu1 %v1916_v1  ;;  %v2104_v1 = vpop.f32.mrf.mxu0  ;;  %v1559_v51 = vsel %vm1555_vm6, %v1550_v52, %v1551_v60  ;;  %v1563_v21 = vsel %vm1555_vm6, %v1554_v63, %v1547_v6 }
 0x105   : > { %2234 = vmatprep.subr.mxu0 %v1899_v4  ;;  %2278 = vmatprep.subr.mxu1 %v1915_v24 }
 0x106   : > { %2235 = vmatpush3.msra.mxu0 %v1899_v4  ;;  %2279 = vmatpush3.msra.mxu1 %v1915_v24  ;;  %v1408_v4 = vsel %vm481_vm2, %v1400_v54, %v1393_v62  ;;  %v691_v24 = vadd.f32 %v2104_v1, %v2848_v27  ;;  %v1565_v54 = vadd.s32 2, %v315_v17  ;;  %v1571_v17 = vadd.s32 2, %v357_v43 }
 0x107   : > { %2236 = vmatprep.subr.mxu0 %v1898_v40  ;;  %2280 = vmatprep.subr.mxu1 %v1914_v29 }
 0x108   : > { %2237 = vmatpush3.msra.mxu0 %v1898_v40  ;;  %2281 = vmatpush3.msra.mxu1 %v1914_v29  ;;  %v1548_v40 = vrot.slane %v2778_v47, 2  ;;  %v1552_v29 = vrot.slane %v2856_v56, 2  ;;  %vm709_vm2 = vcmp.gt.f32.partialorder %v691_v24, 0.0  ;;  %v717_v62 = vmul.f32 0.01, %v691_v24 }
 0x109   : > { %2238 = vmatprep.subr.mxu0 %v1897_v9  ;;  %2282 = vmatprep.subr.mxu1 %v1913_v12  ;;  %vm1581_vm12 = vcmp.lt.s32.totalorder %v1565_v54, 16  ;;  %vm1587_vm4 = vcmp.lt.s32.totalorder %v1571_v17, 16 }
 0x10a   : > { %2239 = vmatpush3.msra.mxu0 %v1897_v9  ;;  %2283 = vmatpush3.msra.mxu1 %v1913_v12  ;;  %v685_v9 = vpop.f32.mrf.mxu0  ;;  %v1940_v12 = vld [vmem:[%s3171_s5 + $0x240] sm:$0xff]  ;;  %v1561_v59 = vsel %vm1555_vm6, %v1548_v40, %v1549_v38  ;;  %v1557_v46 = vsel %vm1555_vm6, %v1552_v29, %v1553_v42 }
 0x10b   : > { %2240 = vmatprep.subr.mxu0 %v1896_v20  ;;  %2284 = vmatprep.subr.mxu1 %v1912_v16  ;;  %v686_v15 = vadd.f32 %v2848_v27, %v685_v9 }
 0x10c   : > { %2241 = vmatpush3.msra.mxu0 %v1896_v20  ;;  %2285 = vmatpush3.msra.mxu1 %v1912_v16  ;;  %v1558_v20 = vsel %vm1555_vm6, %v1551_v60, %v1552_v29  ;;  %v2107_v16 = vpop.f32.mrf.mxu0  ;;  %v1871_v60 = vld [vmem:[%s3172_s6] ss:$0 sm:$0xff] }
 0x10d   : > { %2243 = vmatmul.mubr.f32.vlgmr.msra.gmra.mxu0 %v2778_v47  ;;  %2287 = vmatmul.mubr.msk.f32.vlgmr.msra.gmra.mxu1 %vm507_vm5, %v1406_v18  ;;  %vm706_vm5 = vcmp.gt.f32.partialorder %v676_v45, 0.0  ;;  %v725_v18 = vsel %vm709_vm2, %v691_v24, %v717_v62  ;;  %v716_v31 = vmul.f32 0.01, %v686_v15 }
 0x10e   : > { %2298 = vmatprep.subr.mxu0 %v1947_v14  ;;  %2342 = vmatprep.subr.mxu1 %v1947_v14  ;;  %v722_v0 = vsel %vm706_vm5, %v676_v45, %v714_v39  ;;  %733 = vst [vmem:[%s2893_s14 + $0x58] sm:$0xff] %v725_v18 }
 0x10f   : > { %2245 = vmatprep.mubr.f32.mxu0 %v2786_v23  ;;  %2289 = vmatprep.mubr.f32.mxu1 %v1405_v32  ;;  %730 = vst [vmem:[%s2893_s14 + $0x28] sm:$0xff] %v722_v0  ;;  %v701_v32 = vadd.f32 %v2107_v16, %v2848_v27 }
 0x110   : > { %2299 = vmatpush3.msra.mxu0 %v1947_v14  ;;  %2358 = vmatpush3.msra.mxu1 %v1947_v14  ;;  %v1939_v14 = vld [vmem:[%s3171_s5 + $0x238] sm:$0xff] }
 0x111   : > { %2300 = vmatprep.subr.mxu0 %v1946_v34  ;;  %2343 = vmatprep.subr.mxu1 %v1946_v34  ;;  %vm711_vm10 = vcmp.gt.f32.partialorder %v701_v32, 0.0 }
 0x112   : > { %2301 = vmatpush3.msra.mxu0 %v1946_v34  ;;  %2359 = vmatpush3.msra.mxu1 %v1946_v34  ;;  %v695_v34 = vpop.f32.mrf.mxu0 }
 0x113   : > { %2246 = vmatmul.mubr.f32.gmra.mxu0 %v2798_v33  ;;  %2290 = vmatmul.mubr.msk.f32.gmra.mxu1 %vm509_vm7, %v1404_v36  ;;  %vm3175_vm7 = vcmp.lt.s32.totalorder %v2712_v57, 16  ;;  %v1562_v57 = vsel %vm1555_vm6, %v1547_v6, %v1548_v40  ;;  %v719_v36 = vmul.f32 0.01, %v701_v32  ;;  %v696_v13 = vadd.f32 %v2848_v27, %v695_v34  ;;  %v1936_v27 = vld [vmem:[%s3171_s5 + $0x220] sm:$0xff] }
 0x114   : > { %2302 = vmatprep.subr.mxu0 %v1945_v28  ;;  %2344 = vmatprep.subr.mxu1 %v1945_v28 }
 0x115   : > { %2248 = vmatprep.mubr.f32.mxu0 %v2817_v10  ;;  %2292 = vmatprep.mubr.f32.mxu1 %v1403_v37  ;;  %v1937_v37 = vld [vmem:[%s3171_s5 + $0x228] sm:$0xff]  ;;  %vm710_vm15 = vcmp.gt.f32.partialorder %v696_v13, 0.0  ;;  %v718_v41 = vmul.f32 0.01, %v696_v13 }
 0x116   : > { %2303 = vmatpush3.msra.mxu0 %v1945_v28  ;;  %2360 = vmatpush3.msra.mxu1 %v1945_v28 }
 0x117   : > { %2304 = vmatprep.subr.mxu0 %v1944_v19  ;;  %2345 = vmatprep.subr.mxu1 %v1944_v19  ;;  %v726_v55 = vsel %vm710_vm15, %v696_v13, %v718_v41 }
 0x118   : > { %2305 = vmatpush3.msra.mxu0 %v1944_v19  ;;  %2361 = vmatpush3.msra.mxu1 %v1944_v19  ;;  %v727_v19 = vsel %vm711_vm10, %v701_v32, %v719_v36  ;;  %734 = vst [vmem:[%s2893_s14 + $0x68] sm:$0xff] %v726_v55 }
 0x119   : > { %2249 = vmatmul.mubr.f32.gmra.mxu0 %v2856_v56  ;;  %2293 = vmatmul.mubr.msk.f32.gmra.mxu1 %vm511_vm9, %v1402_v26  ;;  %vm708_vm9 = vcmp.gt.f32.partialorder %v686_v15, 0.0  ;;  %735 = vst [vmem:[%s2893_s14 + $0x78] sm:$0xff] %v727_v19  ;;  %v1933_v26 = vld [vmem:[%s3171_s5 + $0x208] sm:$0xff] }
 0x11a   : > { %2306 = vmatprep.subr.mxu0 %v1943_v58  ;;  %2346 = vmatprep.subr.mxu1 %v1943_v58  ;;  %v724_v28 = vsel %vm708_vm9, %v686_v15, %v716_v31 }
 0x11b   : > { %2251 = vmatprep.mubr.f32.mxu0 %v2808_v30  ;;  %2295 = vmatprep.mubr.f32.mxu1 %v1401_v48  ;;  %732 = vst [vmem:[%s2893_s14 + $0x48] sm:$0xff] %v724_v28 }
 0x11c   : > { %2307 = vmatpush3.msra.mxu0 %v1943_v58  ;;  %2362 = vmatpush3.msra.mxu1 %v1943_v58  ;;  %v1935_v58 = vld [vmem:[%s3171_s5 + $0x218] sm:$0xff] }
 0x11d   : > { %2308 = vmatprep.subr.mxu0 %v1942_v22  ;;  %2347 = vmatprep.subr.mxu1 %v1942_v22 }
 0x11e   : > { %2309 = vmatpush3.msra.mxu0 %v1942_v22  ;;  %2363 = vmatpush3.msra.mxu1 %v1942_v22 }
 0x11f   : > { %2252 = vmatmul.mubr.f32.gmra.mxu0 %v2789_v3  ;;  %2296 = vmatmul.mubr.msk.f32.gmra.mxu1 %vm3175_vm7, %v1408_v4 }
 0x120   : > { %2310 = vmatprep.subr.mxu0 %v1941_v8  ;;  %2348 = vmatprep.subr.mxu1 %v1941_v8 }
 0x121   : > { %2311 = vmatpush3.msra.mxu0 %v1941_v8  ;;  %2364 = vmatpush3.msra.mxu1 %v1941_v8 }
 0x122   : > { %2330 = vmatprep.mubr.f32.mxu0 %v1562_v57  ;;  %2336 = vmatprep.mubr.f32.mxu1 %v1558_v20 }
 0x123   : > { %2312 = vmatprep.subr.mxu0 %v1940_v12  ;;  %2349 = vmatprep.subr.mxu1 %v1940_v12 }
 0x124   : > { %2313 = vmatpush3.msra.mxu0 %v1940_v12  ;;  %2365 = vmatpush3.msra.mxu1 %v1940_v12 }
 0x125   : > { %2314 = vmatprep.subr.mxu0 %v1939_v14  ;;  %2350 = vmatprep.subr.mxu1 %v1939_v14 }
 0x126   : > { %2315 = vmatpush3.msra.mxu0 %v1939_v14  ;;  %2366 = vmatpush3.msra.mxu1 %v1939_v14 }
 0x127   : > { %2316 = vmatprep.subr.mxu0 %v1938_v35  ;;  %2351 = vmatprep.subr.mxu1 %v1938_v35 }
 0x128   : > { %2317 = vmatpush3.msra.mxu0 %v1938_v35  ;;  %2367 = vmatpush3.msra.mxu1 %v1938_v35 }
 0x129   : > { %2318 = vmatprep.subr.mxu0 %v1937_v37  ;;  %2352 = vmatprep.subr.mxu1 %v1937_v37 }
 0x12a   : > { %2319 = vmatpush3.msra.mxu0 %v1937_v37  ;;  %2368 = vmatpush3.msra.mxu1 %v1937_v37 }
 0x12b   : > { %2320 = vmatprep.subr.mxu0 %v1936_v27  ;;  %2353 = vmatprep.subr.mxu1 %v1936_v27 }
 0x12c   : > { %2321 = vmatpush3.msra.mxu0 %v1936_v27  ;;  %2369 = vmatpush3.msra.mxu1 %v1936_v27 }
 0x12d   : > { %2322 = vmatprep.subr.mxu0 %v1935_v58  ;;  %2354 = vmatprep.subr.mxu1 %v1935_v58 }
 0x12e   : > { %2323 = vmatpush3.msra.mxu0 %v1935_v58  ;;  %2370 = vmatpush3.msra.mxu1 %v1935_v58 }
 0x12f   : > { %2324 = vmatprep.subr.mxu0 %v1934_v49  ;;  %2355 = vmatprep.subr.mxu1 %v1934_v49 }
 0x130   : > { %2325 = vmatpush3.msra.mxu0 %v1934_v49  ;;  %2371 = vmatpush3.msra.mxu1 %v1934_v49 }
 0x131   : > { %2326 = vmatprep.subr.mxu0 %v1933_v26  ;;  %2356 = vmatprep.subr.mxu1 %v1933_v26 }
 0x132   : > { %2327 = vmatpush3.msra.mxu0 %v1933_v26  ;;  %2372 = vmatpush3.msra.mxu1 %v1933_v26 }
 0x133   : > { %2328 = vmatprep.subr.mxu0 %v1932_v50  ;;  %2357 = vmatprep.subr.mxu1 %v1932_v50 }
 0x134   : > { %2329 = vmatpush3.msra.mxu0 %v1932_v50  ;;  %2373 = vmatpush3.msra.mxu1 %v1932_v50 }
 0x135   : > { %2331 = vmatmul.mubr.msk.f32.vlgmr.msra.gmra.mxu0 %vm1581_vm12, %v1561_v59  ;;  %2337 = vmatmul.mubr.msk.f32.vlgmr.msra.gmra.mxu1 %vm1585_vm13, %v1557_v46 }
 0x136   : > { %2333 = vmatprep.mubr.f32.mxu0 %v2870_v11  ;;  %2339 = vmatprep.mubr.f32.mxu1 %v2887_v2 }
 0x139   : > { %2334 = vmatmul.mubr.msk.f32.gmra.mxu0 %vm1583_vm14, %v1559_v51  ;;  %2340 = vmatmul.mubr.msk.f32.gmra.mxu1 %vm1587_vm4, %v1563_v21 }
 0x1a6   : > { %v2156_v25 = vpop.f32.mrf.mxu0  ;;  %v2200_v43 = vpop.f32.mrf.mxu1 }
 0x1a7   : > { %v1102_v4 = vadd.f32 %v2156_v25, %v1871_v60 }
 0x1a8   : > { %v1062_v47 = vpop.f32.mrf.mxu0  ;;  %v1216_v23 = vpop.f32.mrf.mxu1 }
 0x1a9   : > { %v1101_v9 = vadd.f32 %v1871_v60, %v1062_v47  ;;  %v1256_v62 = vadd.f32 %v2200_v43, %v1102_v4 }
 0x1ab   : > { %v1255_v34 = vadd.f32 %v1216_v23, %v1101_v9 }
 0x1ac   : > { %v2159_v30 = vpop.f32.mrf.mxu0  ;;  %v2203_v10 = vpop.f32.mrf.mxu1 }
 0x1ad   : > { %v1104_v12 = vadd.f32 %v2159_v30, %v1871_v60 }
 0x1ae   : > { %v1072_v38 = vpop.f32.mrf.mxu0  ;;  %v1226_v33 = vpop.f32.mrf.mxu1 }
 0x1af   : > { %v1103_v16 = vadd.f32 %v1871_v60, %v1072_v38  ;;  %v1258_v35 = vadd.f32 %v2203_v10, %v1104_v12 }
 0x1b1   : > { %v1257_v37 = vadd.f32 %v1226_v33, %v1103_v16 }
 0x1b2   : > { %v2162_v42 = vpop.f32.mrf.mxu0  ;;  %v2206_v56 = vpop.f32.mrf.mxu1 }
 0x1b3   : > { %v1106_v24 = vadd.f32 %v2162_v42, %v1871_v60 }
 0x1b4   : > { %v1082_v52 = vpop.f32.mrf.mxu0  ;;  %v1236_v11 = vpop.f32.mrf.mxu1 }
 0x1b5   : > { %v1260_v15 = vadd.f32 %v2206_v56, %v1106_v24  ;;  %v1105_v57 = vadd.f32 %v1871_v60, %v1082_v52 }
 0x1b7   : > { %v1259_v36 = vadd.f32 %v1236_v11, %v1105_v57 }
 0x1b8   : > { %v2165_v53 = vpop.f32.mrf.mxu0  ;;  %v2209_v2 = vpop.f32.mrf.mxu1 }
 0x1b9   : > { %v1108_v20 = vadd.f32 %v2165_v53, %v1871_v60 }
 0x1ba   : > { %v1092_v3 = vpop.f32.mrf.mxu0  ;;  %v1246_v45 = vpop.f32.mrf.mxu1 }
 0x1bb   : > { %v1107_v28 = vadd.f32 %v1871_v60, %v1092_v3  ;;  %v1262_v13 = vadd.f32 %v2209_v2, %v1108_v20 }
 0x1bd   : > { %v1261_v44 = vadd.f32 %v1246_v45, %v1107_v28 }
 0x1cd   : > { %v2244_v5 = vpop.f32.mrf.mxu0  ;;  %v2288_v63 = vpop.f32.mrf.mxu1 }
 0x1ce   : > { %v1386_v31 = vadd.f32 %v2244_v5, %v1256_v62 }
 0x1cf   : > { %v1346_v48 = vpop.f32.mrf.mxu0  ;;  %v1500_v22 = vpop.f32.mrf.mxu1 }
 0x1d0   : > { %v1385_v19 = vadd.f32 %v1346_v48, %v1255_v34  ;;  %v1540_v58 = vadd.f32 %v2288_v63, %v1386_v31 }
 0x1d2   : > { %v1539_v51 = vadd.f32 %v1500_v22, %v1385_v19 }
 0x1d3   : > { %v2247_v61 = vpop.f32.mrf.mxu0  ;;  %v2291_v39 = vpop.f32.mrf.mxu1 }
 0x1d4   : > { %v1388_v41 = vadd.f32 %v2247_v61, %v1258_v35 }
 0x1d5   : > { %v1356_v8 = vpop.f32.mrf.mxu0  ;;  %v1510_v6 = vpop.f32.mrf.mxu1 }
 0x1d6   : > { %v1387_v50 = vadd.f32 %v1356_v8, %v1257_v37  ;;  %v1542_v21 = vadd.f32 %v2291_v39, %v1388_v41 }
 0x1d8   : > { %v1541_v38 = vadd.f32 %v1510_v6, %v1387_v50 }
 0x1d9   : > { %v2250_v0 = vpop.f32.mrf.mxu0  ;;  %v2294_v1 = vpop.f32.mrf.mxu1 }
 0x1da   : > { %v1390_v32 = vadd.f32 %v2250_v0, %v1260_v15 }
 0x1db   : > { %v1366_v40 = vpop.f32.mrf.mxu0  ;;  %v1520_v29 = vpop.f32.mrf.mxu1 }
 0x1dc   : > { %v1544_v49 = vadd.f32 %v2294_v1, %v1390_v32  ;;  %v1389_v26 = vadd.f32 %v1366_v40, %v1259_v36 }
 0x1de   : > { %v1543_v23 = vadd.f32 %v1520_v29, %v1389_v26 }
 0x1df   : > { %v2253_v14 = vpop.f32.mrf.mxu0  ;;  %v2297_v18 = vpop.f32.mrf.mxu1 }
 0x1e0   : > { %v1392_v54 = vadd.f32 %v2253_v14, %v1262_v13 }
 0x1e1   : > { %v1376_v27 = vpop.f32.mrf.mxu0  ;;  %v1530_v55 = vpop.f32.mrf.mxu1 }
 0x1e2   : > { %v1391_v25 = vadd.f32 %v1376_v27, %v1261_v44  ;;  %v1546_v30 = vadd.f32 %v2297_v18, %v1392_v54 }
 0x1e4   : > { %v1545_v45 = vadd.f32 %v1530_v55, %v1391_v25 }
 0x1f5   : > { %v2332_v7 = vpop.f32.mrf.mxu0  ;;  %v2338_v17 = vpop.f32.mrf.mxu1 }
 0x1f6   : > { %v1743_v59 = vadd.f32 %v2332_v7, %v1540_v58  ;;  %v1747_v46 = vadd.f32 %v2338_v17, %v1544_v49 }
 0x1f7   : > { %v1703_v43 = vpop.f32.mrf.mxu0  ;;  %v1723_v47 = vpop.f32.mrf.mxu1 }
 0x1f8   : > { %vm1751_vm6 = vcmp.gt.f32.partialorder %v1743_v59, 0.0  ;;  %v1759_v10 = vmul.f32 0.01, %v1743_v59  ;;  %v1763_v33 = vmul.f32 0.01, %v1747_v46  ;;  %v1742_v42 = vadd.f32 %v1703_v43, %v1539_v51 }
 0x1f9   : > { %v2335_v56 = vpop.f32.mrf.mxu0  ;;  %v2341_v52 = vpop.f32.mrf.mxu1  ;;  %v1746_v53 = vadd.f32 %v1723_v47, %v1543_v23  ;;  %vm1755_vm11 = vcmp.gt.f32.partialorder %v1747_v46, 0.0 }
 0x1fa   : > { %v1767_v11 = vsel %vm1751_vm6, %v1743_v59, %v1759_v10  ;;  %v1745_v2 = vadd.f32 %v2335_v56, %v1542_v21  ;;  %v1749_v3 = vadd.f32 %v2341_v52, %v1546_v30  ;;  %vm1750_vm0 = vcmp.gt.f32.partialorder %v1742_v42, 0.0 }
 0x1fb   : > { %1775 = vst [vmem:[%s2893_s14 + $0x10] sm:$0xff] %v1767_v11  ;;  %v1758_v5 = vmul.f32 0.01, %v1742_v42  ;;  %v1713_v63 = vpop.f32.mrf.mxu0  ;;  %v1733_v48 = vpop.f32.mrf.mxu1  ;;  %v1771_v60 = vsel %vm1755_vm11, %v1747_v46, %v1763_v33  ;;  %v1762_v0 = vmul.f32 0.01, %v1746_v53  ;;  %vm1754_vm3 = vcmp.gt.f32.partialorder %v1746_v53, 0.0 }
 0x1fc   : > { %vm1753_vm1 = vcmp.gt.f32.partialorder %v1745_v2, 0.0  ;;  %v1761_v22 = vmul.f32 0.01, %v1745_v2  ;;  %v1765_v61 = vmul.f32 0.01, %v1749_v3  ;;  %vm1757_vm8 = vcmp.gt.f32.partialorder %v1749_v3, 0.0 }
 0x1fd   : > { %v1766_v39 = vsel %vm1750_vm0, %v1742_v42, %v1758_v5  ;;  %v1744_v8 = vadd.f32 %v1713_v63, %v1541_v38  ;;  %v1748_v6 = vadd.f32 %v1733_v48, %v1545_v45  ;;  %1779 = vst [vmem:[%s2893_s14 + $0x50] sm:$0xff] %v1771_v60  ;;  %v1770_v9 = vsel %vm1754_vm3, %v1746_v53, %v1762_v0 }
 0x1fe   : > { %1774 = vst [vmem:[%s2893_s14] sm:$0xff] %v1766_v39  ;;  %v1769_v1 = vsel %vm1753_vm1, %v1745_v2, %v1761_v22  ;;  %v1773_v40 = vsel %vm1757_vm8, %v1749_v3, %v1765_v61  ;;  %1778 = vst [vmem:[%s2893_s14 + $0x40] sm:$0xff] %v1770_v9 }
 0x1ff   : > { %1777 = vst [vmem:[%s2893_s14 + $0x30] sm:$0xff] %v1769_v1  ;;  %vm1752_vm5 = vcmp.gt.f32.partialorder %v1744_v8, 0.0  ;;  %v1760_v4 = vmul.f32 0.01, %v1744_v8  ;;  %v1764_v24 = vmul.f32 0.01, %v1748_v6 }
 0x200   : > { %vm1756_vm7 = vcmp.gt.f32.partialorder %v1748_v6, 0.0  ;;  %1781 = vst [vmem:[%s2893_s14 + $0x70] sm:$0xff] %v1773_v40 }
 0x201   : > { %v1768_v29 = vsel %vm1752_vm5, %v1744_v8, %v1760_v4  ;;  %v1772_v12 = vsel %vm1756_vm7, %v1748_v6, %v1764_v24 }
 0x202   : > { %1776 = vst [vmem:[%s2893_s14 + $0x20] sm:$0xff] %v1768_v29  ;;  %1780 = vst [vmem:[%s2893_s14 + $0x60] sm:$0xff] %v1772_v12 }
 0x203 PF: > { %s17_s24 = sadd.s32 1, %s2388_s24  }
 0x204   : > { %p14_p4 = scmp.ge.s32.totalorder %s17_s24, 4  }
 0x206   :  { %16 = sbr.rel (!%p14_p4) target bundleno = 1 (0x1), region = 82 }

</bundles_post_ra>
